<compile_context>
chip_gen: v7x
topology: tpu7x:2x2x1
jax: 0.10.0
libtpu: 0.0.40
codegen_flags: <defaults>
</compile_context>

<pallas_src>
import functools

import jax
import jax.numpy as jnp
from jax import lax
from jax.experimental import pallas as pl
from jax.experimental.pallas import tpu as pltpu


# ------------------------------- small helpers -------------------------------
def _ceil_to(x, m):
    return -(-x // m) * m


def _padded_f32_bytes(*shape):
    """f32 bytes of an array after (8, 128) sublane/lane padding."""
    lead = 1
    for d in shape[:-2]:
        lead *= d
    return lead * _ceil_to(shape[-2], 8) * _ceil_to(shape[-1], 128) * 4


def _pick_batch_block(n, hh, wh, c_big):
    """Fold batch samples per grid step so the matmul M dim (B*Hh*Wh) is
    reasonably large, while keeping the per-step working set bounded and the
    grid length even when possible (v7x megacore)."""
    per_sample = 6 * (hh + 2) * _ceil_to(wh + 2, 8) * _ceil_to(c_big, 128) * 4
    cap = 8 * 2 ** 20
    best = 1
    for b in range(1, n + 1):
        if n % b:
            continue
        if b > 1 and b * per_sample > cap:
            break
        grid_len = n // b
        if b > 1 and grid_len > 1 and grid_len % 2 != 0:
            continue  # keep megacore-friendly grid unless collapsing to 1
        best = b
        if b * hh * wh >= 512:
            break
    return best


# ------------------------- fused Down forward kernel -------------------------
def _down_fused_kernel(x_ref, w1_ref, s1_ref, b1_ref, w2_ref, s2_ref, b2_ref,
                       o_ref, pad_ref, *, B, Hh, Wh, Cin, Cmid, Cout):
    # x_ref  : (B*2*Hh, Wh, 2*Cin)   B samples; lanes = [even-col ch | odd-col ch]
    # w1_ref : (9, Cin, Cmid)        conv1 weights, one (Cin, Cmid) slab per tap
    # w2_ref : (9, Cmid, Cout)       conv2 weights, one (Cmid, Cout) slab per tap
    # s*/b*  : (1, C)                folded eval-mode BatchNorm scale / bias
    # o_ref  : (B*Hh*Wh, Cout)       NHWC-flat output block, rows = (b, y, x)
    # pad_ref: (B, Hh+2, Wh+2, Cmax) shared zero-border halo slab
    M = B * Hh * Wh
    c_max = pad_ref.shape[-1]

    # ---- zero ONLY the 1-pixel halo border (interior is rewritten below) ----
    zrow = jnp.zeros((B, 1, Wh + 2, c_max), jnp.float32)
    zcol = jnp.zeros((B, Hh + 2, 1, c_max), jnp.float32)
    pad_ref[:, 0:1, :, :] = zrow
    pad_ref[:, Hh + 1:Hh + 2, :, :] = zrow
    pad_ref[:, :, 0:1, :] = zcol
    pad_ref[:, :, Wh + 1:Wh + 2, :] = zcol

    # ---------------- MaxPool2d(2), fully in-register ------------------------
    xv = x_ref[...]                                    # (B*2*Hh, Wh, 2*Cin)
    pw = jnp.maximum(xv[..., :Cin], xv[..., Cin:])     # pool along W
    pw = pw.reshape(B * Hh, 2, Wh, Cin)                # pair adjacent rows
    pooled = jnp.maximum(pw[:, 0], pw[:, 1])           # pool along H
    pad_ref[:, 1:Hh + 1, 1:Wh + 1, :Cin] = pooled.reshape(B, Hh, Wh, Cin)

    # ----- conv1 (3x3, pad=1): nine accumulated tap matmuls, then BN+ReLU ----
    acc = None
    for t in range(9):
        dy, dx = divmod(t, 3)
        tap = pad_ref[:, dy:dy + Hh, dx:dx + Wh, :Cin].reshape(M, Cin)
        part = jnp.dot(tap, w1_ref[t], preferred_element_type=jnp.float32)
        acc = part if acc is None else acc + part
    y1 = jnp.maximum(acc * s1_ref[...] + b1_ref[...], 0.0)       # (M, Cmid)

    # ----- conv2 (3x3, pad=1): same scheme, reusing the shared halo slab -----
    pad_ref[:, 1:Hh + 1, 1:Wh + 1, :Cmid] = y1.reshape(B, Hh, Wh, Cmid)
    acc = None
    for t in range(9):
        dy, dx = divmod(t, 3)
        tap = pad_ref[:, dy:dy + Hh, dx:dx + Wh, :Cmid].reshape(M, Cmid)
        part = jnp.dot(tap, w2_ref[t], preferred_element_type=jnp.float32)
        acc = part if acc is None else acc + part
    y2 = jnp.maximum(acc * s2_ref[...] + b2_ref[...], 0.0)       # (M, Cout)

    o_ref[...] = y2.astype(o_ref.dtype)


# ------------------------------- Down module ---------------------------------
def _fold_bn(gamma, beta, mean, var, eps=1e-5):
    scale = gamma / jnp.sqrt(var + eps)
    return scale, beta - mean * scale


def down_forward(x_nchw, params):
    N, Cin, H, W = x_nchw.shape
    assert H % 2 == 0 and W % 2 == 0, "MaxPool2d(2) path assumes even H, W"
    Hh, Wh = H // 2, W // 2
    Cmid = params["w1"].shape[0]
    Cout = params["w2"].shape[0]
    c_max = max(Cin, Cmid)

    B = _pick_batch_block(N, Hh, Wh, max(c_max, Cout))
    M = B * Hh * Wh

    # NCHW -> NHWC once at the module boundary, then FREE contiguous views:
    # adjacent W columns paired on lanes (for the in-kernel pool) and batch
    # folded into the leading row axis.
    x = jnp.transpose(x_nchw, (0, 2, 3, 1)).astype(jnp.float32)
    x = x.reshape(N * H, Wh, 2 * Cin)

    # One-time tiny weight re-layouts: one (C, Cout) slab per 3x3 tap,
    # tap index t = 3*dy + dx (matches the kernel's tap loop / halo offsets).
    w1 = jnp.transpose(params["w1"], (2, 3, 1, 0)).reshape(9, Cin, Cmid)
    w2 = jnp.transpose(params["w2"], (2, 3, 1, 0)).reshape(9, Cmid, Cout)
    w1 = w1.astype(jnp.float32)
    w2 = w2.astype(jnp.float32)

    s1, b1 = _fold_bn(params["bn1_gamma"], params["bn1_beta"],
                      params["bn1_mean"], params["bn1_var"])
    s2, b2 = _fold_bn(params["bn2_gamma"], params["bn2_beta"],
                      params["bn2_mean"], params["bn2_var"])
    s1 = s1.reshape(1, Cmid).astype(jnp.float32)
    b1 = b1.reshape(1, Cmid).astype(jnp.float32)
    s2 = s2.reshape(1, Cout).astype(jnp.float32)
    b2 = b2.reshape(1, Cout).astype(jnp.float32)

    # Explicit VMEM budget (lane/sublane-padded, double-buffered I/O blocks).
    est = (2 * _padded_f32_bytes(B * H, Wh, 2 * Cin)          # input block
           + 2 * _padded_f32_bytes(M, Cout)                    # output block
           + _padded_f32_bytes(B, Hh + 2, Wh + 2, c_max)       # shared halo slab
           + 2 * (_padded_f32_bytes(9, Cin, Cmid)
                  + _padded_f32_bytes(9, Cmid, Cout))          # weights
           + 3 * _padded_f32_bytes(M, c_max)                   # tap / acc temps
           + 2 * _padded_f32_bytes(M, Cout))
    vmem_limit = int(min(96 * 2 ** 20, max(32 * 2 ** 20, 2 * est)))

    kernel = functools.partial(_down_fused_kernel, B=B, Hh=Hh, Wh=Wh,
                               Cin=Cin, Cmid=Cmid, Cout=Cout)
    out = pl.pallas_call(
        kernel,
        grid=(N // B,),
        in_specs=[
            pl.BlockSpec((B * H, Wh, 2 * Cin), lambda n: (n, 0, 0)),
            pl.BlockSpec((9, Cin, Cmid), lambda n: (0, 0, 0)),
            pl.BlockSpec((1, Cmid), lambda n: (0, 0)),
            pl.BlockSpec((1, Cmid), lambda n: (0, 0)),
            pl.BlockSpec((9, Cmid, Cout), lambda n: (0, 0, 0)),
            pl.BlockSpec((1, Cout), lambda n: (0, 0)),
            pl.BlockSpec((1, Cout), lambda n: (0, 0)),
        ],
        out_specs=pl.BlockSpec((M, Cout), lambda n: (n, 0)),
        out_shape=jax.ShapeDtypeStruct((N * Hh * Wh, Cout), x_nchw.dtype),
        scratch_shapes=[pltpu.VMEM((B, Hh + 2, Wh + 2, c_max), jnp.float32)],
        compiler_params=pltpu.CompilerParams(
            dimension_semantics=("parallel",),
            vmem_limit_bytes=vmem_limit),
    )(x, w1, s1, b1, w2, s2, b2)

    # NHWC-flat -> NCHW: free reshape + one small XLA transpose of the final
    # output (kept outside the kernel so no large operand is ever transposed
    # on the XLU inside it).
    out = out.reshape(N, Hh, Wh, Cout)
    return jnp.transpose(out, (0, 3, 1, 2))


# ------------------------- pure-JAX reference (check) -------------------------
def down_reference(x_nchw, params):
    x = lax.reduce_window(x_nchw, -jnp.inf, lax.max,
                          (1, 1, 2, 2), (1, 1, 2, 2), "VALID")

    def conv_bn_relu(x, w, g, be, m, v):
        y = lax.conv_general_dilated(
            x, w, (1, 1), ((1, 1), (1, 1)),
            dimension_numbers=("NCHW", "OIHW", "NCHW"))
        s = (g / jnp.sqrt(v + 1e-5))[None, :, None, None]
        b = (be - m * g / jnp.sqrt(v + 1e-5))[None, :, None, None]
        return jnp.maximum(y * s + b, 0.0)

    x = conv_bn_relu(x, params["w1"], params["bn1_gamma"], params["bn1_beta"],
                     params["bn1_mean"], params["bn1_var"])
    x = conv_bn_relu(x, params["w2"], params["bn2_gamma"], params["bn2_beta"],
                     params["bn2_mean"], params["bn2_var"])
    return x


# ------------------------------------ main ------------------------------------
if __name__ == "__main__":
    N, Cin, Cout, H, W = 2, 4, 8, 16, 16
    ks = jax.random.split(jax.random.PRNGKey(0), 12)

    x = jax.random.normal(ks[0], (N, Cin, H, W), jnp.float32)

    params = {
        # Conv2d(in=Cin, out=Cout, 3x3, bias=False); mid_channels == out_channels
        "w1": 0.2 * jax.random.normal(ks[1], (Cout, Cin, 3, 3), jnp.float32),
        "bn1_gamma": 1.0 + 0.1 * jax.random.normal(ks[2], (Cout,), jnp.float32),
        "bn1_beta": 0.1 * jax.random.normal(ks[3], (Cout,), jnp.float32),
        "bn1_mean": 0.05 * jax.random.normal(ks[4], (Cout,), jnp.float32),
        "bn1_var": 1.0 + 0.1 * jnp.abs(jax.random.normal(ks[5], (Cout,), jnp.float32)),
        # Conv2d(in=Cout, out=Cout, 3x3, bias=False)
        "w2": 0.2 * jax.random.normal(ks[6], (Cout, Cout, 3, 3), jnp.float32),
        "bn2_gamma": 1.0 + 0.1 * jax.random.normal(ks[7], (Cout,), jnp.float32),
        "bn2_beta": 0.1 * jax.random.normal(ks[8], (Cout,), jnp.float32),
        "bn2_mean": 0.05 * jax.random.normal(ks[9], (Cout,), jnp.float32),
        "bn2_var": 1.0 + 0.1 * jnp.abs(jax.random.normal(ks[10], (Cout,), jnp.float32)),
    }

    out = jax.block_until_ready(down_forward(x, params))
    ref = jax.block_until_ready(down_reference(x, params))

    assert out.shape == (N, Cout, H // 2, W // 2), out.shape
    assert jnp.allclose(out, ref, atol=1e-4, rtol=1e-4), \
        float(jnp.max(jnp.abs(out - ref)))

    print("KERNEL_OK")
</pallas_src>

<mosaic_0001>
module attributes {stable_mosaic.version = 11 : i64} {
  func.func @_down_fused_kernel(%arg0: i32, %arg1: memref<32x8x8xf32, #tpu.memory_space<vmem>>, %arg2: memref<9x4x8xf32, #tpu.memory_space<vmem>>, %arg3: memref<1x8xf32, #tpu.memory_space<vmem>>, %arg4: memref<1x8xf32, #tpu.memory_space<vmem>>, %arg5: memref<9x8x8xf32, #tpu.memory_space<vmem>>, %arg6: memref<1x8xf32, #tpu.memory_space<vmem>>, %arg7: memref<1x8xf32, #tpu.memory_space<vmem>>, %arg8: memref<128x8xf32, #tpu.memory_space<vmem>>, %arg9: memref<2x10x10x8xf32, #tpu.memory_space<vmem>>) attributes {dimension_semantics = [#tpu.dimension_semantics<parallel>], iteration_bounds = array<i64: 1>, scalar_prefetch = 0 : i64, scratch_operands = 1 : i64, tpu.core_type = #tpu.core_type<tc>, window_params = [{transform_indices = @transform_0, window_bounds = array<i64: 32, 8, 8>}, {pipeline_mode = #tpu.pipeline_mode<synchronous>, transform_indices = @transform_1, window_bounds = array<i64: 9, 4, 8>}, {pipeline_mode = #tpu.pipeline_mode<synchronous>, transform_indices = @transform_2, window_bounds = array<i64: 1, 8>}, {pipeline_mode = #tpu.pipeline_mode<synchronous>, transform_indices = @transform_3, window_bounds = array<i64: 1, 8>}, {pipeline_mode = #tpu.pipeline_mode<synchronous>, transform_indices = @transform_4, window_bounds = array<i64: 9, 8, 8>}, {pipeline_mode = #tpu.pipeline_mode<synchronous>, transform_indices = @transform_5, window_bounds = array<i64: 1, 8>}, {pipeline_mode = #tpu.pipeline_mode<synchronous>, transform_indices = @transform_6, window_bounds = array<i64: 1, 8>}, {transform_indices = @transform_7, window_bounds = array<i64: 128, 8>}]} {
    %cst = arith.constant 0.000000e+00 : f32
    %0 = vector.broadcast %cst : f32 to vector<2x1x10x8xf32>
    %cst_0 = arith.constant 0.000000e+00 : f32
    %1 = vector.broadcast %cst_0 : f32 to vector<2x10x1x8xf32>
    %c0 = arith.constant 0 : index
    %c0_1 = arith.constant 0 : index
    %c0_2 = arith.constant 0 : index
    %c0_3 = arith.constant 0 : index
    %2 = vector.load %arg9[%c0, %c0_1, %c0_2, %c0_3] : memref<2x10x10x8xf32, #tpu.memory_space<vmem>>, vector<2x1x10x8xf32>
    tpu.vector_store %arg9[%c0, %c0_1, %c0_2, %c0_3], %0 {strides = array<i32>} : memref<2x10x10x8xf32, #tpu.memory_space<vmem>>, vector<2x1x10x8xf32>,
    %c0_4 = arith.constant 0 : index
    %c9 = arith.constant 9 : index
    %c0_5 = arith.constant 0 : index
    %c0_6 = arith.constant 0 : index
    %3 = vector.load %arg9[%c0_4, %c9, %c0_5, %c0_6] : memref<2x10x10x8xf32, #tpu.memory_space<vmem>>, vector<2x1x10x8xf32>
    tpu.vector_store %arg9[%c0_4, %c9, %c0_5, %c0_6], %0 {strides = array<i32>} : memref<2x10x10x8xf32, #tpu.memory_space<vmem>>, vector<2x1x10x8xf32>,
    %c0_7 = arith.constant 0 : index
    %c0_8 = arith.constant 0 : index
    %c0_9 = arith.constant 0 : index
    %c0_10 = arith.constant 0 : index
    %4 = vector.load %arg9[%c0_7, %c0_8, %c0_9, %c0_10] : memref<2x10x10x8xf32, #tpu.memory_space<vmem>>, vector<2x10x1x8xf32>
    tpu.vector_store %arg9[%c0_7, %c0_8, %c0_9, %c0_10], %1 {strides = array<i32>} : memref<2x10x10x8xf32, #tpu.memory_space<vmem>>, vector<2x10x1x8xf32>,
    %c0_11 = arith.constant 0 : index
    %c0_12 = arith.constant 0 : index
    %c9_13 = arith.constant 9 : index
    %c0_14 = arith.constant 0 : index
    %5 = vector.load %arg9[%c0_11, %c0_12, %c9_13, %c0_14] : memref<2x10x10x8xf32, #tpu.memory_space<vmem>>, vector<2x10x1x8xf32>
    tpu.vector_store %arg9[%c0_11, %c0_12, %c9_13, %c0_14], %1 {strides = array<i32>} : memref<2x10x10x8xf32, #tpu.memory_space<vmem>>, vector<2x10x1x8xf32>,
    %c0_15 = arith.constant 0 : index
    %c0_16 = arith.constant 0 : index
    %c0_17 = arith.constant 0 : index
    %6 = vector.load %arg1[%c0_15, %c0_16, %c0_17] : memref<32x8x8xf32, #tpu.memory_space<vmem>>, vector<32x8x8xf32>
    %7 = vector.extract_strided_slice %6 {offsets = [0, 0, 0], sizes = [32, 8, 4], strides = [1, 1, 1]} : vector<32x8x8xf32> to vector<32x8x4xf32>
    %8 = vector.extract_strided_slice %6 {offsets = [0, 0, 4], sizes = [32, 8, 4], strides = [1, 1, 1]} : vector<32x8x8xf32> to vector<32x8x4xf32>
    %9 = arith.maximumf %7, %8 : vector<32x8x4xf32>
    %10 = vector.shape_cast %9 : vector<32x8x4xf32> to vector<16x2x8x4xf32>
    %11 = vector.extract_strided_slice %10 {offsets = [0, 0, 0, 0], sizes = [16, 1, 8, 4], strides = [1, 1, 1, 1]} : vector<16x2x8x4xf32> to vector<16x1x8x4xf32>
    %12 = vector.shape_cast %11 : vector<16x1x8x4xf32> to vector<16x8x4xf32>
    %13 = vector.extract_strided_slice %10 {offsets = [0, 1, 0, 0], sizes = [16, 1, 8, 4], strides = [1, 1, 1, 1]} : vector<16x2x8x4xf32> to vector<16x1x8x4xf32>
    %14 = vector.shape_cast %13 : vector<16x1x8x4xf32> to vector<16x8x4xf32>
    %15 = arith.maximumf %12, %14 : vector<16x8x4xf32>
    %16 = vector.shape_cast %15 : vector<16x8x4xf32> to vector<2x8x8x4xf32>
    %c0_18 = arith.constant 0 : index
    %c1 = arith.constant 1 : index
    %c1_19 = arith.constant 1 : index
    %c0_20 = arith.constant 0 : index
    %17 = vector.load %arg9[%c0_18, %c1, %c1_19, %c0_20] : memref<2x10x10x8xf32, #tpu.memory_space<vmem>>, vector<2x8x8x4xf32>
    tpu.vector_store %arg9[%c0_18, %c1, %c1_19, %c0_20], %16 {strides = array<i32>} : memref<2x10x10x8xf32, #tpu.memory_space<vmem>>, vector<2x8x8x4xf32>,
    %c0_21 = arith.constant 0 : index
    %c0_22 = arith.constant 0 : index
    %c0_23 = arith.constant 0 : index
    %c0_24 = arith.constant 0 : index
    %18 = vector.load %arg9[%c0_21, %c0_22, %c0_23, %c0_24] : memref<2x10x10x8xf32, #tpu.memory_space<vmem>>, vector<2x8x8x4xf32>
    %19 = vector.shape_cast %18 : vector<2x8x8x4xf32> to vector<128x4xf32>
    %c0_25 = arith.constant 0 : index
    %c0_26 = arith.constant 0 : index
    %c0_27 = arith.constant 0 : index
    %20 = vector.load %arg2[%c0_25, %c0_26, %c0_27] : memref<9x4x8xf32, #tpu.memory_space<vmem>>, vector<1x4x8xf32>
    %21 = vector.shape_cast %20 : vector<1x4x8xf32> to vector<4x8xf32>
    %cst_28 = arith.constant dense<0.000000e+00> : vector<128x8xf32>
    %22 = tpu.matmul %19, %21, %cst_28 {dimension_numbers = #tpu.dot_dimension_numbers<[1], [0], [0], [1], [0, 0, 1, 1], [], []>} : vector<128x4xf32>, vector<4x8xf32>, vector<128x8xf32> -> vector<128x8xf32>
    %c0_29 = arith.constant 0 : index
    %c0_30 = arith.constant 0 : index
    %c1_31 = arith.constant 1 : index
    %c0_32 = arith.constant 0 : index
    %23 = vector.load %arg9[%c0_29, %c0_30, %c1_31, %c0_32] : memref<2x10x10x8xf32, #tpu.memory_space<vmem>>, vector<2x8x8x4xf32>
    %24 = vector.shape_cast %23 : vector<2x8x8x4xf32> to vector<128x4xf32>
    %c1_33 = arith.constant 1 : index
    %c0_34 = arith.constant 0 : index
    %c0_35 = arith.constant 0 : index
    %25 = vector.load %arg2[%c1_33, %c0_34, %c0_35] : memref<9x4x8xf32, #tpu.memory_space<vmem>>, vector<1x4x8xf32>
    %26 = vector.shape_cast %25 : vector<1x4x8xf32> to vector<4x8xf32>
    %cst_36 = arith.constant dense<0.000000e+00> : vector<128x8xf32>
    %27 = tpu.matmul %24, %26, %cst_36 {dimension_numbers = #tpu.dot_dimension_numbers<[1], [0], [0], [1], [0, 0, 1, 1], [], []>} : vector<128x4xf32>, vector<4x8xf32>, vector<128x8xf32> -> vector<128x8xf32>
    %28 = arith.addf %22, %27 : vector<128x8xf32>
    %c0_37 = arith.constant 0 : index
    %c0_38 = arith.constant 0 : index
    %c2 = arith.constant 2 : index
    %c0_39 = arith.constant 0 : index
    %29 = vector.load %arg9[%c0_37, %c0_38, %c2, %c0_39] : memref<2x10x10x8xf32, #tpu.memory_space<vmem>>, vector<2x8x8x4xf32>
    %30 = vector.shape_cast %29 : vector<2x8x8x4xf32> to vector<128x4xf32>
    %c2_40 = arith.constant 2 : index
    %c0_41 = arith.constant 0 : index
    %c0_42 = arith.constant 0 : index
    %31 = vector.load %arg2[%c2_40, %c0_41, %c0_42] : memref<9x4x8xf32, #tpu.memory_space<vmem>>, vector<1x4x8xf32>
    %32 = vector.shape_cast %31 : vector<1x4x8xf32> to vector<4x8xf32>
    %cst_43 = arith.constant dense<0.000000e+00> : vector<128x8xf32>
    %33 = tpu.matmul %30, %32, %cst_43 {dimension_numbers = #tpu.dot_dimension_numbers<[1], [0], [0], [1], [0, 0, 1, 1], [], []>} : vector<128x4xf32>, vector<4x8xf32>, vector<128x8xf32> -> vector<128x8xf32>
    %34 = arith.addf %28, %33 : vector<128x8xf32>
    %c0_44 = arith.constant 0 : index
    %c1_45 = arith.constant 1 : index
    %c0_46 = arith.constant 0 : index
    %c0_47 = arith.constant 0 : index
    %35 = vector.load %arg9[%c0_44, %c1_45, %c0_46, %c0_47] : memref<2x10x10x8xf32, #tpu.memory_space<vmem>>, vector<2x8x8x4xf32>
    %36 = vector.shape_cast %35 : vector<2x8x8x4xf32> to vector<128x4xf32>
    %c3 = arith.constant 3 : index
    %c0_48 = arith.constant 0 : index
    %c0_49 = arith.constant 0 : index
    %37 = vector.load %arg2[%c3, %c0_48, %c0_49] : memref<9x4x8xf32, #tpu.memory_space<vmem>>, vector<1x4x8xf32>
    %38 = vector.shape_cast %37 : vector<1x4x8xf32> to vector<4x8xf32>
    %cst_50 = arith.constant dense<0.000000e+00> : vector<128x8xf32>
    %39 = tpu.matmul %36, %38, %cst_50 {dimension_numbers = #tpu.dot_dimension_numbers<[1], [0], [0], [1], [0, 0, 1, 1], [], []>} : vector<128x4xf32>, vector<4x8xf32>, vector<128x8xf32> -> vector<128x8xf32>
    %40 = arith.addf %34, %39 : vector<128x8xf32>
    %c0_51 = arith.constant 0 : index
    %c1_52 = arith.constant 1 : index
    %c1_53 = arith.constant 1 : index
    %c0_54 = arith.constant 0 : index
    %41 = vector.load %arg9[%c0_51, %c1_52, %c1_53, %c0_54] : memref<2x10x10x8xf32, #tpu.memory_space<vmem>>, vector<2x8x8x4xf32>
    %42 = vector.shape_cast %41 : vector<2x8x8x4xf32> to vector<128x4xf32>
    %c4 = arith.constant 4 : index
    %c0_55 = arith.constant 0 : index
    %c0_56 = arith.constant 0 : index
    %43 = vector.load %arg2[%c4, %c0_55, %c0_56] : memref<9x4x8xf32, #tpu.memory_space<vmem>>, vector<1x4x8xf32>
    %44 = vector.shape_cast %43 : vector<1x4x8xf32> to vector<4x8xf32>
    %cst_57 = arith.constant dense<0.000000e+00> : vector<128x8xf32>
    %45 = tpu.matmul %42, %44, %cst_57 {dimension_numbers = #tpu.dot_dimension_numbers<[1], [0], [0], [1], [0, 0, 1, 1], [], []>} : vector<128x4xf32>, vector<4x8xf32>, vector<128x8xf32> -> vector<128x8xf32>
    %46 = arith.addf %40, %45 : vector<128x8xf32>
    %c0_58 = arith.constant 0 : index
    %c1_59 = arith.constant 1 : index
    %c2_60 = arith.constant 2 : index
    %c0_61 = arith.constant 0 : index
    %47 = vector.load %arg9[%c0_58, %c1_59, %c2_60, %c0_61] : memref<2x10x10x8xf32, #tpu.memory_space<vmem>>, vector<2x8x8x4xf32>
    %48 = vector.shape_cast %47 : vector<2x8x8x4xf32> to vector<128x4xf32>
    %c5 = arith.constant 5 : index
    %c0_62 = arith.constant 0 : index
    %c0_63 = arith.constant 0 : index
    %49 = vector.load %arg2[%c5, %c0_62, %c0_63] : memref<9x4x8xf32, #tpu.memory_space<vmem>>, vector<1x4x8xf32>
    %50 = vector.shape_cast %49 : vector<1x4x8xf32> to vector<4x8xf32>
    %cst_64 = arith.constant dense<0.000000e+00> : vector<128x8xf32>
    %51 = tpu.matmul %48, %50, %cst_64 {dimension_numbers = #tpu.dot_dimension_numbers<[1], [0], [0], [1], [0, 0, 1, 1], [], []>} : vector<128x4xf32>, vector<4x8xf32>, vector<128x8xf32> -> vector<128x8xf32>
    %52 = arith.addf %46, %51 : vector<128x8xf32>
    %c0_65 = arith.constant 0 : index
    %c2_66 = arith.constant 2 : index
    %c0_67 = arith.constant 0 : index
    %c0_68 = arith.constant 0 : index
    %53 = vector.load %arg9[%c0_65, %c2_66, %c0_67, %c0_68] : memref<2x10x10x8xf32, #tpu.memory_space<vmem>>, vector<2x8x8x4xf32>
    %54 = vector.shape_cast %53 : vector<2x8x8x4xf32> to vector<128x4xf32>
    %c6 = arith.constant 6 : index
    %c0_69 = arith.constant 0 : index
    %c0_70 = arith.constant 0 : index
    %55 = vector.load %arg2[%c6, %c0_69, %c0_70] : memref<9x4x8xf32, #tpu.memory_space<vmem>>, vector<1x4x8xf32>
    %56 = vector.shape_cast %55 : vector<1x4x8xf32> to vector<4x8xf32>
    %cst_71 = arith.constant dense<0.000000e+00> : vector<128x8xf32>
    %57 = tpu.matmul %54, %56, %cst_71 {dimension_numbers = #tpu.dot_dimension_numbers<[1], [0], [0], [1], [0, 0, 1, 1], [], []>} : vector<128x4xf32>, vector<4x8xf32>, vector<128x8xf32> -> vector<128x8xf32>
    %58 = arith.addf %52, %57 : vector<128x8xf32>
    %c0_72 = arith.constant 0 : index
    %c2_73 = arith.constant 2 : index
    %c1_74 = arith.constant 1 : index
    %c0_75 = arith.constant 0 : index
    %59 = vector.load %arg9[%c0_72, %c2_73, %c1_74, %c0_75] : memref<2x10x10x8xf32, #tpu.memory_space<vmem>>, vector<2x8x8x4xf32>
    %60 = vector.shape_cast %59 : vector<2x8x8x4xf32> to vector<128x4xf32>
    %c7 = arith.constant 7 : index
    %c0_76 = arith.constant 0 : index
    %c0_77 = arith.constant 0 : index
    %61 = vector.load %arg2[%c7, %c0_76, %c0_77] : memref<9x4x8xf32, #tpu.memory_space<vmem>>, vector<1x4x8xf32>
    %62 = vector.shape_cast %61 : vector<1x4x8xf32> to vector<4x8xf32>
    %cst_78 = arith.constant dense<0.000000e+00> : vector<128x8xf32>
    %63 = tpu.matmul %60, %62, %cst_78 {dimension_numbers = #tpu.dot_dimension_numbers<[1], [0], [0], [1], [0, 0, 1, 1], [], []>} : vector<128x4xf32>, vector<4x8xf32>, vector<128x8xf32> -> vector<128x8xf32>
    %64 = arith.addf %58, %63 : vector<128x8xf32>
    %c0_79 = arith.constant 0 : index
    %c2_80 = arith.constant 2 : index
    %c2_81 = arith.constant 2 : index
    %c0_82 = arith.constant 0 : index
    %65 = vector.load %arg9[%c0_79, %c2_80, %c2_81, %c0_82] : memref<2x10x10x8xf32, #tpu.memory_space<vmem>>, vector<2x8x8x4xf32>
    %66 = vector.shape_cast %65 : vector<2x8x8x4xf32> to vector<128x4xf32>
    %c8 = arith.constant 8 : index
    %c0_83 = arith.constant 0 : index
    %c0_84 = arith.constant 0 : index
    %67 = vector.load %arg2[%c8, %c0_83, %c0_84] : memref<9x4x8xf32, #tpu.memory_space<vmem>>, vector<1x4x8xf32>
    %68 = vector.shape_cast %67 : vector<1x4x8xf32> to vector<4x8xf32>
    %cst_85 = arith.constant dense<0.000000e+00> : vector<128x8xf32>
    %69 = tpu.matmul %66, %68, %cst_85 {dimension_numbers = #tpu.dot_dimension_numbers<[1], [0], [0], [1], [0, 0, 1, 1], [], []>} : vector<128x4xf32>, vector<4x8xf32>, vector<128x8xf32> -> vector<128x8xf32>
    %70 = arith.addf %64, %69 : vector<128x8xf32>
    %c0_86 = arith.constant 0 : index
    %c0_87 = arith.constant 0 : index
    %71 = vector.load %arg3[%c0_86, %c0_87] : memref<1x8xf32, #tpu.memory_space<vmem>>, vector<1x8xf32>
    %72 = vector.broadcast %71 : vector<1x8xf32> to vector<128x8xf32>
    %73 = arith.mulf %70, %72 : vector<128x8xf32>
    %c0_88 = arith.constant 0 : index
    %c0_89 = arith.constant 0 : index
    %74 = vector.load %arg4[%c0_88, %c0_89] : memref<1x8xf32, #tpu.memory_space<vmem>>, vector<1x8xf32>
    %75 = vector.broadcast %74 : vector<1x8xf32> to vector<128x8xf32>
    %76 = arith.addf %73, %75 : vector<128x8xf32>
    %cst_90 = arith.constant 0.000000e+00 : f32
    %77 = vector.broadcast %cst_90 : f32 to vector<128x8xf32>
    %78 = arith.maximumf %76, %77 : vector<128x8xf32>
    %79 = vector.shape_cast %78 : vector<128x8xf32> to vector<2x8x8x8xf32>
    %c0_91 = arith.constant 0 : index
    %c1_92 = arith.constant 1 : index
    %c1_93 = arith.constant 1 : index
    %c0_94 = arith.constant 0 : index
    %80 = vector.load %arg9[%c0_91, %c1_92, %c1_93, %c0_94] : memref<2x10x10x8xf32, #tpu.memory_space<vmem>>, vector<2x8x8x8xf32>
    tpu.vector_store %arg9[%c0_91, %c1_92, %c1_93, %c0_94], %79 {strides = array<i32>} : memref<2x10x10x8xf32, #tpu.memory_space<vmem>>, vector<2x8x8x8xf32>,
    %c0_95 = arith.constant 0 : index
    %c0_96 = arith.constant 0 : index
    %c0_97 = arith.constant 0 : index
    %c0_98 = arith.constant 0 : index
    %81 = vector.load %arg9[%c0_95, %c0_96, %c0_97, %c0_98] : memref<2x10x10x8xf32, #tpu.memory_space<vmem>>, vector<2x8x8x8xf32>
    %82 = vector.shape_cast %81 : vector<2x8x8x8xf32> to vector<128x8xf32>
    %c0_99 = arith.constant 0 : index
    %c0_100 = arith.constant 0 : index
    %c0_101 = arith.constant 0 : index
    %83 = vector.load %arg5[%c0_99, %c0_100, %c0_101] : memref<9x8x8xf32, #tpu.memory_space<vmem>>, vector<1x8x8xf32>
    %84 = vector.shape_cast %83 : vector<1x8x8xf32> to vector<8x8xf32>
    %cst_102 = arith.constant dense<0.000000e+00> : vector<128x8xf32>
    %85 = tpu.matmul %82, %84, %cst_102 {dimension_numbers = #tpu.dot_dimension_numbers<[1], [0], [0], [1], [0, 0, 1, 1], [], []>} : vector<128x8xf32>, vector<8x8xf32>, vector<128x8xf32> -> vector<128x8xf32>
    %c0_103 = arith.constant 0 : index
    %c0_104 = arith.constant 0 : index
    %c1_105 = arith.constant 1 : index
    %c0_106 = arith.constant 0 : index
    %86 = vector.load %arg9[%c0_103, %c0_104, %c1_105, %c0_106] : memref<2x10x10x8xf32, #tpu.memory_space<vmem>>, vector<2x8x8x8xf32>
    %87 = vector.shape_cast %86 : vector<2x8x8x8xf32> to vector<128x8xf32>
    %c1_107 = arith.constant 1 : index
    %c0_108 = arith.constant 0 : index
    %c0_109 = arith.constant 0 : index
    %88 = vector.load %arg5[%c1_107, %c0_108, %c0_109] : memref<9x8x8xf32, #tpu.memory_space<vmem>>, vector<1x8x8xf32>
    %89 = vector.shape_cast %88 : vector<1x8x8xf32> to vector<8x8xf32>
    %cst_110 = arith.constant dense<0.000000e+00> : vector<128x8xf32>
    %90 = tpu.matmul %87, %89, %cst_110 {dimension_numbers = #tpu.dot_dimension_numbers<[1], [0], [0], [1], [0, 0, 1, 1], [], []>} : vector<128x8xf32>, vector<8x8xf32>, vector<128x8xf32> -> vector<128x8xf32>
    %91 = arith.addf %85, %90 : vector<128x8xf32>
    %c0_111 = arith.constant 0 : index
    %c0_112 = arith.constant 0 : index
    %c2_113 = arith.constant 2 : index
    %c0_114 = arith.constant 0 : index
    %92 = vector.load %arg9[%c0_111, %c0_112, %c2_113, %c0_114] : memref<2x10x10x8xf32, #tpu.memory_space<vmem>>, vector<2x8x8x8xf32>
    %93 = vector.shape_cast %92 : vector<2x8x8x8xf32> to vector<128x8xf32>
    %c2_115 = arith.constant 2 : index
    %c0_116 = arith.constant 0 : index
    %c0_117 = arith.constant 0 : index
    %94 = vector.load %arg5[%c2_115, %c0_116, %c0_117] : memref<9x8x8xf32, #tpu.memory_space<vmem>>, vector<1x8x8xf32>
    %95 = vector.shape_cast %94 : vector<1x8x8xf32> to vector<8x8xf32>
    %cst_118 = arith.constant dense<0.000000e+00> : vector<128x8xf32>
    %96 = tpu.matmul %93, %95, %cst_118 {dimension_numbers = #tpu.dot_dimension_numbers<[1], [0], [0], [1], [0, 0, 1, 1], [], []>} : vector<128x8xf32>, vector<8x8xf32>, vector<128x8xf32> -> vector<128x8xf32>
    %97 = arith.addf %91, %96 : vector<128x8xf32>
    %c0_119 = arith.constant 0 : index
    %c1_120 = arith.constant 1 : index
    %c0_121 = arith.constant 0 : index
    %c0_122 = arith.constant 0 : index
    %98 = vector.load %arg9[%c0_119, %c1_120, %c0_121, %c0_122] : memref<2x10x10x8xf32, #tpu.memory_space<vmem>>, vector<2x8x8x8xf32>
    %99 = vector.shape_cast %98 : vector<2x8x8x8xf32> to vector<128x8xf32>
    %c3_123 = arith.constant 3 : index
    %c0_124 = arith.constant 0 : index
    %c0_125 = arith.constant 0 : index
    %100 = vector.load %arg5[%c3_123, %c0_124, %c0_125] : memref<9x8x8xf32, #tpu.memory_space<vmem>>, vector<1x8x8xf32>
    %101 = vector.shape_cast %100 : vector<1x8x8xf32> to vector<8x8xf32>
    %cst_126 = arith.constant dense<0.000000e+00> : vector<128x8xf32>
    %102 = tpu.matmul %99, %101, %cst_126 {dimension_numbers = #tpu.dot_dimension_numbers<[1], [0], [0], [1], [0, 0, 1, 1], [], []>} : vector<128x8xf32>, vector<8x8xf32>, vector<128x8xf32> -> vector<128x8xf32>
    %103 = arith.addf %97, %102 : vector<128x8xf32>
    %c0_127 = arith.constant 0 : index
    %c1_128 = arith.constant 1 : index
    %c1_129 = arith.constant 1 : index
    %c0_130 = arith.constant 0 : index
    %104 = vector.load %arg9[%c0_127, %c1_128, %c1_129, %c0_130] : memref<2x10x10x8xf32, #tpu.memory_space<vmem>>, vector<2x8x8x8xf32>
    %105 = vector.shape_cast %104 : vector<2x8x8x8xf32> to vector<128x8xf32>
    %c4_131 = arith.constant 4 : index
    %c0_132 = arith.constant 0 : index
    %c0_133 = arith.constant 0 : index
    %106 = vector.load %arg5[%c4_131, %c0_132, %c0_133] : memref<9x8x8xf32, #tpu.memory_space<vmem>>, vector<1x8x8xf32>
    %107 = vector.shape_cast %106 : vector<1x8x8xf32> to vector<8x8xf32>
    %cst_134 = arith.constant dense<0.000000e+00> : vector<128x8xf32>
    %108 = tpu.matmul %105, %107, %cst_134 {dimension_numbers = #tpu.dot_dimension_numbers<[1], [0], [0], [1], [0, 0, 1, 1], [], []>} : vector<128x8xf32>, vector<8x8xf32>, vector<128x8xf32> -> vector<128x8xf32>
    %109 = arith.addf %103, %108 : vector<128x8xf32>
    %c0_135 = arith.constant 0 : index
    %c1_136 = arith.constant 1 : index
    %c2_137 = arith.constant 2 : index
    %c0_138 = arith.constant 0 : index
    %110 = vector.load %arg9[%c0_135, %c1_136, %c2_137, %c0_138] : memref<2x10x10x8xf32, #tpu.memory_space<vmem>>, vector<2x8x8x8xf32>
    %111 = vector.shape_cast %110 : vector<2x8x8x8xf32> to vector<128x8xf32>
    %c5_139 = arith.constant 5 : index
    %c0_140 = arith.constant 0 : index
    %c0_141 = arith.constant 0 : index
    %112 = vector.load %arg5[%c5_139, %c0_140, %c0_141] : memref<9x8x8xf32, #tpu.memory_space<vmem>>, vector<1x8x8xf32>
    %113 = vector.shape_cast %112 : vector<1x8x8xf32> to vector<8x8xf32>
    %cst_142 = arith.constant dense<0.000000e+00> : vector<128x8xf32>
    %114 = tpu.matmul %111, %113, %cst_142 {dimension_numbers = #tpu.dot_dimension_numbers<[1], [0], [0], [1], [0, 0, 1, 1], [], []>} : vector<128x8xf32>, vector<8x8xf32>, vector<128x8xf32> -> vector<128x8xf32>
    %115 = arith.addf %109, %114 : vector<128x8xf32>
    %c0_143 = arith.constant 0 : index
    %c2_144 = arith.constant 2 : index
    %c0_145 = arith.constant 0 : index
    %c0_146 = arith.constant 0 : index
    %116 = vector.load %arg9[%c0_143, %c2_144, %c0_145, %c0_146] : memref<2x10x10x8xf32, #tpu.memory_space<vmem>>, vector<2x8x8x8xf32>
    %117 = vector.shape_cast %116 : vector<2x8x8x8xf32> to vector<128x8xf32>
    %c6_147 = arith.constant 6 : index
    %c0_148 = arith.constant 0 : index
    %c0_149 = arith.constant 0 : index
    %118 = vector.load %arg5[%c6_147, %c0_148, %c0_149] : memref<9x8x8xf32, #tpu.memory_space<vmem>>, vector<1x8x8xf32>
    %119 = vector.shape_cast %118 : vector<1x8x8xf32> to vector<8x8xf32>
    %cst_150 = arith.constant dense<0.000000e+00> : vector<128x8xf32>
    %120 = tpu.matmul %117, %119, %cst_150 {dimension_numbers = #tpu.dot_dimension_numbers<[1], [0], [0], [1], [0, 0, 1, 1], [], []>} : vector<128x8xf32>, vector<8x8xf32>, vector<128x8xf32> -> vector<128x8xf32>
    %121 = arith.addf %115, %120 : vector<128x8xf32>
    %c0_151 = arith.constant 0 : index
    %c2_152 = arith.constant 2 : index
    %c1_153 = arith.constant 1 : index
    %c0_154 = arith.constant 0 : index
    %122 = vector.load %arg9[%c0_151, %c2_152, %c1_153, %c0_154] : memref<2x10x10x8xf32, #tpu.memory_space<vmem>>, vector<2x8x8x8xf32>
    %123 = vector.shape_cast %122 : vector<2x8x8x8xf32> to vector<128x8xf32>
    %c7_155 = arith.constant 7 : index
    %c0_156 = arith.constant 0 : index
    %c0_157 = arith.constant 0 : index
    %124 = vector.load %arg5[%c7_155, %c0_156, %c0_157] : memref<9x8x8xf32, #tpu.memory_space<vmem>>, vector<1x8x8xf32>
    %125 = vector.shape_cast %124 : vector<1x8x8xf32> to vector<8x8xf32>
    %cst_158 = arith.constant dense<0.000000e+00> : vector<128x8xf32>
    %126 = tpu.matmul %123, %125, %cst_158 {dimension_numbers = #tpu.dot_dimension_numbers<[1], [0], [0], [1], [0, 0, 1, 1], [], []>} : vector<128x8xf32>, vector<8x8xf32>, vector<128x8xf32> -> vector<128x8xf32>
    %127 = arith.addf %121, %126 : vector<128x8xf32>
    %c0_159 = arith.constant 0 : index
    %c2_160 = arith.constant 2 : index
    %c2_161 = arith.constant 2 : index
    %c0_162 = arith.constant 0 : index
    %128 = vector.load %arg9[%c0_159, %c2_160, %c2_161, %c0_162] : memref<2x10x10x8xf32, #tpu.memory_space<vmem>>, vector<2x8x8x8xf32>
    %129 = vector.shape_cast %128 : vector<2x8x8x8xf32> to vector<128x8xf32>
    %c8_163 = arith.constant 8 : index
    %c0_164 = arith.constant 0 : index
    %c0_165 = arith.constant 0 : index
    %130 = vector.load %arg5[%c8_163, %c0_164, %c0_165] : memref<9x8x8xf32, #tpu.memory_space<vmem>>, vector<1x8x8xf32>
    %131 = vector.shape_cast %130 : vector<1x8x8xf32> to vector<8x8xf32>
    %cst_166 = arith.constant dense<0.000000e+00> : vector<128x8xf32>
    %132 = tpu.matmul %129, %131, %cst_166 {dimension_numbers = #tpu.dot_dimension_numbers<[1], [0], [0], [1], [0, 0, 1, 1], [], []>} : vector<128x8xf32>, vector<8x8xf32>, vector<128x8xf32> -> vector<128x8xf32>
    %133 = arith.addf %127, %132 : vector<128x8xf32>
    %c0_167 = arith.constant 0 : index
    %c0_168 = arith.constant 0 : index
    %134 = vector.load %arg6[%c0_167, %c0_168] : memref<1x8xf32, #tpu.memory_space<vmem>>, vector<1x8xf32>
    %135 = vector.broadcast %134 : vector<1x8xf32> to vector<128x8xf32>
    %136 = arith.mulf %133, %135 : vector<128x8xf32>
    %c0_169 = arith.constant 0 : index
    %c0_170 = arith.constant 0 : index
    %137 = vector.load %arg7[%c0_169, %c0_170] : memref<1x8xf32, #tpu.memory_space<vmem>>, vector<1x8xf32>
    %138 = vector.broadcast %137 : vector<1x8xf32> to vector<128x8xf32>
    %139 = arith.addf %136, %138 : vector<128x8xf32>
    %cst_171 = arith.constant 0.000000e+00 : f32
    %140 = vector.broadcast %cst_171 : f32 to vector<128x8xf32>
    %141 = arith.maximumf %139, %140 : vector<128x8xf32>
    %c0_172 = arith.constant 0 : index
    %c0_173 = arith.constant 0 : index
    %142 = vector.load %arg8[%c0_172, %c0_173] : memref<128x8xf32, #tpu.memory_space<vmem>>, vector<128x8xf32>
    tpu.vector_store %arg8[%c0_172, %c0_173], %141 {strides = array<i32>} : memref<128x8xf32, #tpu.memory_space<vmem>>, vector<128x8xf32>,
    return
  }
  func.func @transform_0(%arg0: i32) -> (i32, i32, i32) {
    %c0_i32 = arith.constant 0 : i32
    %c0_i32_0 = arith.constant 0 : i32
    %c0_i32_1 = arith.constant 0 : i32
    return %arg0, %c0_i32, %c0_i32_0 : i32, i32, i32
  }
  func.func @transform_1(%arg0: i32) -> (i32, i32, i32) {
    %c0_i32 = arith.constant 0 : i32
    %c0_i32_0 = arith.constant 0 : i32
    %c0_i32_1 = arith.constant 0 : i32
    %c0_i32_2 = arith.constant 0 : i32
    return %c0_i32, %c0_i32_0, %c0_i32_1 : i32, i32, i32
  }
  func.func @transform_2(%arg0: i32) -> (i32, i32) {
    %c0_i32 = arith.constant 0 : i32
    %c0_i32_0 = arith.constant 0 : i32
    %c0_i32_1 = arith.constant 0 : i32
    return %c0_i32, %c0_i32_0 : i32, i32
  }
  func.func @transform_3(%arg0: i32) -> (i32, i32) {
    %c0_i32 = arith.constant 0 : i32
    %c0_i32_0 = arith.constant 0 : i32
    %c0_i32_1 = arith.constant 0 : i32
    return %c0_i32, %c0_i32_0 : i32, i32
  }
  func.func @transform_4(%arg0: i32) -> (i32, i32, i32) {
    %c0_i32 = arith.constant 0 : i32
    %c0_i32_0 = arith.constant 0 : i32
    %c0_i32_1 = arith.constant 0 : i32
    %c0_i32_2 = arith.constant 0 : i32
    return %c0_i32, %c0_i32_0, %c0_i32_1 : i32, i32, i32
  }
  func.func @transform_5(%arg0: i32) -> (i32, i32) {
    %c0_i32 = arith.constant 0 : i32
    %c0_i32_0 = arith.constant 0 : i32
    %c0_i32_1 = arith.constant 0 : i32
    return %c0_i32, %c0_i32_0 : i32, i32
  }
  func.func @transform_6(%arg0: i32) -> (i32, i32) {
    %c0_i32 = arith.constant 0 : i32
    %c0_i32_0 = arith.constant 0 : i32
    %c0_i32_1 = arith.constant 0 : i32
    return %c0_i32, %c0_i32_0 : i32, i32
  }
  func.func @transform_7(%arg0: i32) -> (i32, i32) {
    %c0_i32 = arith.constant 0 : i32
    %c0_i32_0 = arith.constant 0 : i32
    return %arg0, %c0_i32 : i32, i32
  }
}

</mosaic_0001>

<bundles_post_ra>
// kernel: tpu_custom_call.1
= control target key start
LH: loop header
LB: loop body
LE: loop exit
PB: predicated region body
PF: predicated region fallthrough
CT: control target
= control target key end

     0   :  { %vm26_vm0 = vcmask 64512   ;;  %vm28_vm1 = vcmask 58368   ;;  %v5862_v2 = vmov 0.0   ;;  %vm37_vm2 = vcmask 57344   ;;  %s5863_s28 = smov 124   ;;  %s7200_s0 = inlined_call_operand.vmem [shape: f32[32,8,8], index: 0, kind: input, shape index: {}]   ;;  %s7201_s1 = inlined_call_operand.vmem [shape: f32[9,4,8], index: 1, kind: input, shape index: {}]   ;;  %s7202_s4 = inlined_call_operand.vmem [shape: f32[9,8,8], index: 4, kind: input, shape index: {}]   ;;  %s7203_s2 = inlined_call_operand.vmem [shape: f32[1,8], index: 2, kind: input, shape index: {}]   ;;  %s7204_s3 = inlined_call_operand.vmem [shape: f32[1,8], index: 3, kind: input, shape index: {}]   ;;  %s7205_s5 = inlined_call_operand.vmem [shape: f32[1,8], index: 5, kind: input, shape index: {}]   ;;  %s7206_s6 = inlined_call_operand.vmem [shape: f32[1,8], index: 6, kind: input, shape index: {}]   ;;  %s7207_s7 = inlined_call_operand.vmem [shape: f32[128,8], index: 7, kind: output, shape index: {}]  }
   0x1   :  { %v5907_v0 = vld [vmem:[%s7200_s0 + $0x10] sm:$0xff]  ;;  %v5912_v1 = vld [vmem:[%s7200_s0] sm:$0xff]  ;;  %27 = vst.msk [vmem:[#allocation2] sm:$0xff] %vm26_vm0, %v5862_v2  ;;  %30 = vst.msk [vmem:[#allocation2 + $0xa0] sm:$0xff] %vm26_vm0, %v5862_v2  ;;  %vm387_vm3 = vcmask 1043456   ;;  %vm287_vm4 = vcmask 31744  }
   0x2   :  { %29 = vst.msk [vmem:[#allocation2 + $0x8] sm:$0x3] %vm28_vm1, %v5862_v2  ;;  %31 = vst.msk [vmem:[#allocation2 + $0xa8] sm:$0x3] %vm28_vm1, %v5862_v2  ;;  %146 = vrot.lane.b32.xlu1 %v5907_v0, %s5863_s28  ;;  %142 = vrot.lane.b32.xlu0 %v5912_v1, %s5863_s28  ;;  %v5965_v3 = vld [vmem:[%s7200_s0 + $0x18] sm:$0xff]  ;;  %v5970_v4 = vld [vmem:[%s7200_s0 + $0x8] sm:$0xff] }
   0x3   :  { %33 = vst.msk [vmem:[#allocation2 + $0x90] sm:$0xff] %vm26_vm0, %v5862_v2  ;;  %35 = vst.msk [vmem:[#allocation2 + $0x130] sm:$0xff] %vm26_vm0, %v5862_v2  ;;  %v5979_v5 = vld [vmem:[%s7200_s0 + $0x28] sm:$0xff]  ;;  %v5984_v6 = vld [vmem:[%s7200_s0 + $0x20] sm:$0xff] }
   0x4   :  { %34 = vst.msk [vmem:[#allocation2 + $0x98] sm:$0x3] %vm28_vm1, %v5862_v2  ;;  %36 = vst.msk [vmem:[#allocation2 + $0x138] sm:$0x3] %vm28_vm1, %v5862_v2  ;;  %v5993_v8 = vld [vmem:[%s7200_s0 + $0x38] sm:$0xff]  ;;  %v5998_v9 = vld [vmem:[%s7200_s0 + $0x30] sm:$0xff] }
   0x5   :  { %38 = vst.msk [vmem:[#allocation2] sm:$0x1] %vm37_vm2, %v5862_v2  ;;  %39 = vst.msk [vmem:[#allocation2 + $0x10] sm:$0x1] %vm37_vm2, %v5862_v2  ;;  %v4513_v10 = vld [vmem:[%s7201_s1 + $0x4] sm:$0xf] }
   0x6   :  { %40 = vst.msk [vmem:[#allocation2 + $0x20] sm:$0x1] %vm37_vm2, %v5862_v2  ;;  %41 = vst.msk [vmem:[#allocation2 + $0x30] sm:$0x1] %vm37_vm2, %v5862_v2  ;;  %148 = vrot.lane.b32.xlu1 %v5965_v3, %s5863_s28  ;;  %144 = vrot.lane.b32.xlu0 %v5970_v4, %s5863_s28  ;;  %v6014_v11 = vld [vmem:[%s7200_s0 + $0x48] sm:$0xff]  ;;  %v6019_v12 = vld [vmem:[%s7200_s0 + $0x40] sm:$0xff] }
   0x7   :  { %42 = vst.msk [vmem:[#allocation2 + $0x40] sm:$0x1] %vm37_vm2, %v5862_v2  ;;  %43 = vst.msk [vmem:[#allocation2 + $0x50] sm:$0x1] %vm37_vm2, %v5862_v2  ;;  %5136 = vmatprep.subr.msk.mxu0 %vm387_vm3, %v4513_v10  ;;  %v6028_v13 = vld [vmem:[%s7200_s0 + $0x58] sm:$0xff]  ;;  %v6033_v14 = vld [vmem:[%s7200_s0 + $0x50] sm:$0xff] }
   0x8   :  { %44 = vst.msk [vmem:[#allocation2 + $0x60] sm:$0x1] %vm37_vm2, %v5862_v2  ;;  %45 = vst.msk [vmem:[#allocation2 + $0x70] sm:$0x1] %vm37_vm2, %v5862_v2  ;;  %5137 = vmatpush3.msk.msra.mxu0 %vm387_vm3, %v4513_v10  ;;  %v6042_v15 = vld [vmem:[%s7200_s0 + $0x68] sm:$0xff]  ;;  %v6047_v16 = vld [vmem:[%s7200_s0 + $0x60] sm:$0xff] }
   0x9   :  { %46 = vst.msk [vmem:[#allocation2 + $0x80] sm:$0x1] %vm37_vm2, %v5862_v2  ;;  %47 = vst.msk [vmem:[#allocation2 + $0x90] sm:$0x1] %vm37_vm2, %v5862_v2  ;;  %v321_v7 = vld [vmem:[#allocation2 + $0x1] sm:$0xff]  ;;  %v6077_v20 = vld [vmem:[%s7200_s0 + $0x98] sm:$0xff] }
   0xa   :  { %48 = vst.msk [vmem:[#allocation2 + $0xa0] sm:$0x1] %vm37_vm2, %v5862_v2  ;;  %49 = vst.msk [vmem:[#allocation2 + $0xb0] sm:$0x1] %vm37_vm2, %v5862_v2  ;;  %152 = vrot.lane.b32.xlu1 %v5979_v5, %s5863_s28  ;;  %150 = vrot.lane.b32.xlu0 %v5984_v6, %s5863_s28  ;;  %v6052_v17 = vld [vmem:[%s7201_s1] sm:$0xf] }
   0xb   :  { %50 = vst.msk [vmem:[#allocation2 + $0xc0] sm:$0x1] %vm37_vm2, %v5862_v2  ;;  %51 = vst.msk [vmem:[#allocation2 + $0xd0] sm:$0x1] %vm37_vm2, %v5862_v2  ;;  %5138 = vmatprep.mubr.msk.f32.mxu0 %vm287_vm4, %v321_v7  ;;  %5372 = vmatprep.mubr.msk.f32.mxu1 %vm26_vm0, %v321_v7  ;;  %v6061_v18 = vld [vmem:[%s7200_s0 + $0x88] sm:$0xff]  ;;  %v6066_v19 = vld [vmem:[%s7200_s0 + $0x80] sm:$0xff] }
   0xc   :  { %52 = vst.msk [vmem:[#allocation2 + $0xe0] sm:$0x1] %vm37_vm2, %v5862_v2  ;;  %53 = vst.msk [vmem:[#allocation2 + $0xf0] sm:$0x1] %vm37_vm2, %v5862_v2  ;;  %5162 = vmatprep.subr.msk.mxu0 %vm387_vm3, %v6052_v17  ;;  %v6082_v21 = vld [vmem:[%s7200_s0 + $0x90] sm:$0xff]  ;;  %v6091_v22 = vld [vmem:[%s7200_s0 + $0xa8] sm:$0xff] }
   0xd   :  { %54 = vst.msk [vmem:[#allocation2 + $0x100] sm:$0x1] %vm37_vm2, %v5862_v2  ;;  %55 = vst.msk [vmem:[#allocation2 + $0x110] sm:$0x1] %vm37_vm2, %v5862_v2  ;;  %v6096_v23 = vld [vmem:[%s7200_s0 + $0xa0] sm:$0xff]  ;;  %v6105_v24 = vld [vmem:[%s7200_s0 + $0xb8] sm:$0xff] }
   0xe   :  { %56 = vst.msk [vmem:[#allocation2 + $0x120] sm:$0x1] %vm37_vm2, %v5862_v2  ;;  %57 = vst.msk [vmem:[#allocation2 + $0x130] sm:$0x1] %vm37_vm2, %v5862_v2  ;;  %156 = vrot.lane.b32.xlu1 %v5993_v8, %s5863_s28  ;;  %154 = vrot.lane.b32.xlu0 %v5998_v9, %s5863_s28  ;;  %v6110_v25 = vld [vmem:[%s7200_s0 + $0xb0] sm:$0xff]  ;;  %v6119_v26 = vld [vmem:[%s7200_s0 + $0xc8] sm:$0xff] }
   0xf   :  { %58 = vst.msk [vmem:[#allocation2 + $0x9] sm:$0x1] %vm37_vm2, %v5862_v2  ;;  %59 = vst.msk [vmem:[#allocation2 + $0x19] sm:$0x1] %vm37_vm2, %v5862_v2  ;;  %v6124_v27 = vld [vmem:[%s7200_s0 + $0xc0] sm:$0xff]  ;;  %v6133_v28 = vld [vmem:[%s7200_s0 + $0xd8] sm:$0xff] }
  0x10   :  { %60 = vst.msk [vmem:[#allocation2 + $0x29] sm:$0x1] %vm37_vm2, %v5862_v2  ;;  %61 = vst.msk [vmem:[#allocation2 + $0x39] sm:$0x1] %vm37_vm2, %v5862_v2  ;;  %v6138_v29 = vld [vmem:[%s7200_s0 + $0xd0] sm:$0xff]  ;;  %v6147_v30 = vld [vmem:[%s7200_s0 + $0xe8] sm:$0xff] }
  0x11   :  { %62 = vst.msk [vmem:[#allocation2 + $0x49] sm:$0x1] %vm37_vm2, %v5862_v2  ;;  %63 = vst.msk [vmem:[#allocation2 + $0x59] sm:$0x1] %vm37_vm2, %v5862_v2  ;;  %v6152_v31 = vld [vmem:[%s7200_s0 + $0xe0] sm:$0xff]  ;;  %v6161_v32 = vld [vmem:[%s7200_s0 + $0x78] sm:$0xff] }
  0x12   :  { %64 = vst.msk [vmem:[#allocation2 + $0x69] sm:$0x1] %vm37_vm2, %v5862_v2  ;;  %65 = vst.msk [vmem:[#allocation2 + $0x79] sm:$0x1] %vm37_vm2, %v5862_v2  ;;  %160 = vrot.lane.b32.xlu1 %v6014_v11, %s5863_s28  ;;  %158 = vrot.lane.b32.xlu0 %v6019_v12, %s5863_s28  ;;  %v6166_v33 = vld [vmem:[%s7200_s0 + $0x70] sm:$0xff]  ;;  %v6175_v34 = vld [vmem:[%s7200_s0 + $0xf8] sm:$0xff] }
  0x13   :  { %66 = vst.msk [vmem:[#allocation2 + $0x89] sm:$0x1] %vm37_vm2, %v5862_v2  ;;  %67 = vst.msk [vmem:[#allocation2 + $0x99] sm:$0x1] %vm37_vm2, %v5862_v2  ;;  %v6180_v35 = vld [vmem:[%s7200_s0 + $0xf0] sm:$0xff] }
  0x14   :  { %68 = vst.msk [vmem:[#allocation2 + $0xa9] sm:$0x1] %vm37_vm2, %v5862_v2  ;;  %69 = vst.msk [vmem:[#allocation2 + $0xb9] sm:$0x1] %vm37_vm2, %v5862_v2  ;;  %v6204_v60 = vld [vmem:[%s7201_s1 + $0x8] sm:$0xf] }
  0x15   :  { %70 = vst.msk [vmem:[#allocation2 + $0xc9] sm:$0x1] %vm37_vm2, %v5862_v2  ;;  %71 = vst.msk [vmem:[#allocation2 + $0xd9] sm:$0x1] %vm37_vm2, %v5862_v2 }
  0x16   :  { %72 = vst.msk [vmem:[#allocation2 + $0xe9] sm:$0x1] %vm37_vm2, %v5862_v2  ;;  %73 = vst.msk [vmem:[#allocation2 + $0xf9] sm:$0x1] %vm37_vm2, %v5862_v2  ;;  %164 = vrot.lane.b32.xlu1 %v6028_v13, %s5863_s28  ;;  %162 = vrot.lane.b32.xlu0 %v6033_v14, %s5863_s28 }
  0x17   :  { %74 = vst.msk [vmem:[#allocation2 + $0x109] sm:$0x1] %vm37_vm2, %v5862_v2  ;;  %75 = vst.msk [vmem:[#allocation2 + $0x119] sm:$0x1] %vm37_vm2, %v5862_v2 }
  0x18   :  { %76 = vst.msk [vmem:[#allocation2 + $0x129] sm:$0x1] %vm37_vm2, %v5862_v2  ;;  %77 = vst.msk [vmem:[#allocation2 + $0x139] sm:$0x1] %vm37_vm2, %v5862_v2 }
  0x1a   :  { %168 = vrot.lane.b32.xlu1 %v6042_v15, %s5863_s28  ;;  %166 = vrot.lane.b32.xlu0 %v6047_v16, %s5863_s28 }
  0x1e   :  { %176 = vrot.lane.b32.xlu1 %v6061_v18, %s5863_s28  ;;  %174 = vrot.lane.b32.xlu0 %v6066_v19, %s5863_s28 }
  0x22   :  { %180 = vrot.lane.b32.xlu1 %v6077_v20, %s5863_s28  ;;  %178 = vrot.lane.b32.xlu0 %v6082_v21, %s5863_s28 }
  0x26   :  { %184 = vrot.lane.b32.xlu1 %v6091_v22, %s5863_s28  ;;  %182 = vrot.lane.b32.xlu0 %v6096_v23, %s5863_s28 }
  0x2a   :  { %188 = vrot.lane.b32.xlu1 %v6105_v24, %s5863_s28  ;;  %186 = vrot.lane.b32.xlu0 %v6110_v25, %s5863_s28 }
  0x2e   :  { %192 = vrot.lane.b32.xlu1 %v6119_v26, %s5863_s28  ;;  %190 = vrot.lane.b32.xlu0 %v6124_v27, %s5863_s28 }
  0x32   :  { %196 = vrot.lane.b32.xlu1 %v6133_v28, %s5863_s28  ;;  %194 = vrot.lane.b32.xlu0 %v6138_v29, %s5863_s28 }
  0x36   :  { %200 = vrot.lane.b32.xlu1 %v6147_v30, %s5863_s28  ;;  %198 = vrot.lane.b32.xlu0 %v6152_v31, %s5863_s28 }
  0x3a   :  { %172 = vrot.lane.b32.xlu1 %v6161_v32, %s5863_s28  ;;  %170 = vrot.lane.b32.xlu0 %v6166_v33, %s5863_s28 }
  0x3e   :  { %204 = vrot.lane.b32.xlu1 %v6175_v34, %s5863_s28  ;;  %202 = vrot.lane.b32.xlu0 %v6180_v35, %s5863_s28 }
  0x74   :  { %v147_v36 = vpop.permute.xlu1 %146  ;;  %v143_v37 = vpop.permute.xlu0 %142 }
  0x75   :  { %v240_v40 = vmax.f32 %v5907_v0, %v147_v36  ;;  %v238_v41 = vmax.f32 %v5912_v1, %v143_v37 }
  0x78   :  { %v149_v38 = vpop.permute.xlu1 %148  ;;  %v145_v39 = vpop.permute.xlu0 %144 }
  0x79   :  { %v241_v42 = vmax.f32 %v5965_v3, %v149_v38  ;;  %v239_v43 = vmax.f32 %v5970_v4, %v145_v39 }
  0x7b   :  { %v271_v44 = vmax.f32 %v240_v40, %v241_v42  ;;  %v270_v45 = vmax.f32 %v238_v41, %v239_v43  ;;  %v6245_v41 = vld [vmem:[#allocation2 + $0xa1] sm:$0xff] }
  0x7c   :  { %v153_v46 = vpop.permute.xlu1 %152  ;;  %v151_v47 = vpop.permute.xlu0 %150 }
  0x7d   :  { %289 = vst.msk [vmem:[#allocation2 + $0x21] sm:$0xff] %vm287_vm4, %v271_v44  ;;  %288 = vst.msk [vmem:[#allocation2 + $0x11] sm:$0xff] %vm287_vm4, %v270_v45  ;;  %v243_v48 = vmax.f32 %v5979_v5, %v153_v46  ;;  %v242_v49 = vmax.f32 %v5984_v6, %v151_v47 }
  0x7f   :  { %v272_v50 = vmax.f32 %v242_v49, %v243_v48 }
  0x80   :  { %v157_v51 = vpop.permute.xlu1 %156  ;;  %v155_v52 = vpop.permute.xlu0 %154 }
  0x81   :  { %290 = vst.msk [vmem:[#allocation2 + $0x31] sm:$0xff] %vm287_vm4, %v272_v50  ;;  %v245_v53 = vmax.f32 %v5993_v8, %v157_v51  ;;  %v244_v54 = vmax.f32 %v5998_v9, %v155_v52 }
  0x83   :  { %v273_v55 = vmax.f32 %v244_v54, %v245_v53 }
  0x84   :  { %v161_v56 = vpop.permute.xlu1 %160  ;;  %v159_v57 = vpop.permute.xlu0 %158  ;;  %v6197_v58 = vld [vmem:[#allocation2 + $0x11] sm:$0xff]  ;;  %v6199_v59 = vld [vmem:[#allocation2 + $0x21] sm:$0xff] }
  0x85   :  { %291 = vst.msk [vmem:[#allocation2 + $0x41] sm:$0xff] %vm287_vm4, %v273_v55  ;;  %v247_v61 = vmax.f32 %v6014_v11, %v161_v56  ;;  %v246_v62 = vmax.f32 %v6019_v12, %v159_v57  ;;  %5139 = vmatmul.mubr.msk.f32.vlgmr.msra.gmra.mrb[0].mxu0 %vm287_vm4, %v6197_v58 }
  0x86   :  { %5141 = vmatprep.mubr.msk.f32.mxu0 %vm287_vm4, %v6199_v59  ;;  %5163 = vmatpush3.msk.msra.mxu0 %vm387_vm3, %v6052_v17 }
  0x87   :  { %v274_v63 = vmax.f32 %v246_v62, %v247_v61  ;;  %5188 = vmatprep.subr.msk.mxu0 %vm387_vm3, %v6204_v60 }
  0x88   :  { %v165_v0 = vpop.permute.xlu1 %164  ;;  %v163_v1 = vpop.permute.xlu0 %162  ;;  %v6217_v2 = vld [vmem:[#allocation2 + $0x31] sm:$0xff] }
  0x89   :  { %292 = vst.msk [vmem:[#allocation2 + $0x51] sm:$0xff] %vm287_vm4, %v274_v63  ;;  %v249_v3 = vmax.f32 %v6028_v13, %v165_v0  ;;  %v248_v4 = vmax.f32 %v6033_v14, %v163_v1  ;;  %5142 = vmatmul.mubr.msk.f32.gmra.mrb[2].mxu0 %vm287_vm4, %v6217_v2 }
  0x8b   :  { %v275_v5 = vmax.f32 %v248_v4, %v249_v3 }
  0x8c   :  { %v169_v6 = vpop.permute.xlu1 %168  ;;  %v167_v7 = vpop.permute.xlu0 %166  ;;  %v6224_v8 = vld [vmem:[#allocation2 + $0x41] sm:$0xff] }
  0x8d   :  { %293 = vst.msk [vmem:[#allocation2 + $0x61] sm:$0xff] %vm287_vm4, %v275_v5  ;;  %v251_v9 = vmax.f32 %v6042_v15, %v169_v6  ;;  %v250_v10 = vmax.f32 %v6047_v16, %v167_v7  ;;  %5144 = vmatprep.mubr.msk.f32.mxu0 %vm287_vm4, %v6224_v8 }
  0x8f   :  { %v276_v11 = vmax.f32 %v250_v10, %v251_v9 }
  0x90   :  { %v177_v12 = vpop.permute.xlu1 %176  ;;  %v175_v13 = vpop.permute.xlu0 %174  ;;  %v6231_v14 = vld [vmem:[#allocation2 + $0x51] sm:$0xff] }
  0x91   :  { %294 = vst.msk [vmem:[#allocation2 + $0x71] sm:$0xff] %vm287_vm4, %v276_v11  ;;  %v255_v17 = vmax.f32 %v6061_v18, %v177_v12  ;;  %v254_v36 = vmax.f32 %v6066_v19, %v175_v13  ;;  %5145 = vmatmul.mubr.msk.f32.gmra.mrb[4].mxu0 %vm287_vm4, %v6231_v14  ;;  %v6298_v11 = vld [vmem:[#allocation2] sm:$0xff]  ;;  %v6321_v13 = vld [vmem:[#allocation2 + $0x30] sm:$0xff] }
  0x93   :  { %v278_v15 = vmax.f32 %v254_v36, %v255_v17  ;;  %v6325_v17 = vld [vmem:[#allocation2 + $0x40] sm:$0xff]  ;;  %v6329_v36 = vld [vmem:[#allocation2 + $0x50] sm:$0xff] }
  0x94   :  { %v181_v37 = vpop.permute.xlu1 %180  ;;  %v179_v16 = vpop.permute.xlu0 %178  ;;  %v6238_v38 = vld [vmem:[#allocation2 + $0x61] sm:$0xff] }
  0x95   :  { %296 = vst.msk [vmem:[#allocation2 + $0xb1] sm:$0xff] %vm287_vm4, %v278_v15  ;;  %v257_v39 = vmax.f32 %v6077_v20, %v181_v37  ;;  %v256_v40 = vmax.f32 %v6082_v21, %v179_v16  ;;  %5147 = vmatprep.mubr.msk.f32.mxu0 %vm287_vm4, %v6238_v38  ;;  %v6337_v15 = vld [vmem:[#allocation2 + $0xa0] sm:$0xff] }
  0x97   :  { %v279_v18 = vmax.f32 %v256_v40, %v257_v39 }
  0x98   :  { %v185_v19 = vpop.permute.xlu1 %184  ;;  %v183_v42 = vpop.permute.xlu0 %182  ;;  %v6247_v43 = vld [vmem:[#allocation2 + $0x71] sm:$0xff] }
  0x99   :  { %297 = vst.msk [vmem:[#allocation2 + $0xc1] sm:$0xff] %vm287_vm4, %v279_v18  ;;  %v259_v44 = vmax.f32 %v6091_v22, %v185_v19  ;;  %v258_v45 = vmax.f32 %v6096_v23, %v183_v42  ;;  %5148 = vmatmul.mubr.msk.f32.gmra.mrb[6].mxu0 %vm287_vm4, %v6247_v43  ;;  %v6339_v37 = vld [vmem:[#allocation2 + $0x70] sm:$0xff] }
  0x9a   :  { %5150 = vmatprep.mubr.msk.f32.mxu0 %vm287_vm4, %v6245_v41 }
  0x9b   :  { %v280_v20 = vmax.f32 %v258_v45, %v259_v44  ;;  %v6366_v44 = vld [vmem:[#allocation2 + $0x2] sm:$0xff] }
  0x9c   :  { %v189_v21 = vpop.permute.xlu1 %188  ;;  %v187_v46 = vpop.permute.xlu0 %186  ;;  %v6256_v47 = vld [vmem:[#allocation2 + $0xb1] sm:$0xff] }
  0x9d   :  { %298 = vst.msk [vmem:[#allocation2 + $0xd1] sm:$0xff] %vm287_vm4, %v280_v20  ;;  %v261_v48 = vmax.f32 %v6105_v24, %v189_v21  ;;  %v260_v49 = vmax.f32 %v6110_v25, %v187_v46  ;;  %5151 = vmatmul.mubr.msk.f32.gmra.mrb[8].mxu0 %vm287_vm4, %v6256_v47  ;;  %v313_v16 = vld [vmem:[#allocation2 + $0xb0] sm:$0xff]  ;;  %v6381_v46 = vld [vmem:[#allocation2 + $0x22] sm:$0xff] }
  0x9e   :  { %v6374_v20 = vld [vmem:[#allocation2 + $0x12] sm:$0xff] }
  0x9f   :  { %v281_v22 = vmax.f32 %v260_v49, %v261_v48  ;;  %v4584_v21 = vld [vmem:[%s7201_s1 + $0x10] sm:$0xf]  ;;  %v6391_v49 = vld [vmem:[#allocation2 + $0x42] sm:$0xff] }
  0xa0   :  { %v193_v23 = vpop.permute.xlu1 %192  ;;  %v191_v50 = vpop.permute.xlu0 %190  ;;  %v6263_v51 = vld [vmem:[#allocation2 + $0xc1] sm:$0xff]  ;;  %v6387_v48 = vld [vmem:[#allocation2 + $0x32] sm:$0xff] }
  0xa1   :  { %299 = vst.msk [vmem:[#allocation2 + $0xe1] sm:$0xff] %vm287_vm4, %v281_v22  ;;  %v263_v52 = vmax.f32 %v6119_v26, %v193_v23  ;;  %v262_v53 = vmax.f32 %v6124_v27, %v191_v50  ;;  %5153 = vmatprep.mubr.msk.f32.mxu0 %vm287_vm4, %v6263_v51  ;;  %v6346_v39 = vld [vmem:[#allocation2 + $0xc0] sm:$0xff]  ;;  %v6395_v22 = vld [vmem:[#allocation2 + $0x52] sm:$0xff] }
  0xa2   :  { %v6399_v23 = vld [vmem:[#allocation2 + $0x62] sm:$0xff] }
  0xa3   :  { %v282_v24 = vmax.f32 %v262_v53, %v263_v52  ;;  %v6403_v50 = vld [vmem:[#allocation2 + $0xa2] sm:$0xff]  ;;  %v6405_v52 = vld [vmem:[#allocation2 + $0x72] sm:$0xff] }
  0xa4   :  { %v197_v54 = vpop.permute.xlu1 %196  ;;  %v195_v25 = vpop.permute.xlu0 %194  ;;  %v6270_v55 = vld [vmem:[#allocation2 + $0xd1] sm:$0xff] }
  0xa5   :  { %300 = vst.msk [vmem:[#allocation2 + $0xf1] sm:$0xff] %vm287_vm4, %v282_v24  ;;  %v265_v56 = vmax.f32 %v6133_v28, %v197_v54  ;;  %v264_v57 = vmax.f32 %v6138_v29, %v195_v25  ;;  %5154 = vmatmul.mubr.msk.f32.gmra.mrb[10].mxu0 %vm287_vm4, %v6270_v55  ;;  %v6350_v40 = vld [vmem:[#allocation2 + $0xd0] sm:$0xff]  ;;  %v6415_v24 = vld [vmem:[#allocation2 + $0xc2] sm:$0xff] }
  0xa6   :  { %v6411_v53 = vld [vmem:[#allocation2 + $0xb2] sm:$0xff] }
  0xa7   :  { %v283_v26 = vmax.f32 %v264_v57, %v265_v56  ;;  %v6419_v54 = vld [vmem:[#allocation2 + $0xd2] sm:$0xff] }
  0xa8   :  { %v201_v61 = vpop.permute.xlu1 %200  ;;  %v199_v27 = vpop.permute.xlu0 %198  ;;  %v6277_v62 = vld [vmem:[#allocation2 + $0xe1] sm:$0xff] }
  0xa9   :  { %301 = vst.msk [vmem:[#allocation2 + $0x101] sm:$0xff] %vm287_vm4, %v283_v26  ;;  %v267_v63 = vmax.f32 %v6147_v30, %v201_v61  ;;  %v266_v0 = vmax.f32 %v6152_v31, %v199_v27  ;;  %5156 = vmatprep.mubr.msk.f32.mxu0 %vm287_vm4, %v6277_v62  ;;  %v6354_v18 = vld [vmem:[#allocation2 + $0xe0] sm:$0xff]  ;;  %v4602_v61 = vld [vmem:[%s7201_s1 + $0x14] sm:$0xf] }
  0xaa   :  { %v6423_v25 = vld [vmem:[#allocation2 + $0xe2] sm:$0xff] }
  0xab   :  { %v284_v28 = vmax.f32 %v266_v0, %v267_v63  ;;  %v4620_v0 = vld [vmem:[%s7201_s1 + $0x18] sm:$0xf] }
  0xac   :  { %v6284_v1 = vld [vmem:[#allocation2 + $0xf1] sm:$0xff]  ;;  %v173_v29 = vpop.permute.xlu1 %172  ;;  %v171_v3 = vpop.permute.xlu0 %170 }
  0xad   :  { %302 = vst.msk [vmem:[#allocation2 + $0x111] sm:$0xff] %vm287_vm4, %v284_v28  ;;  %5157 = vmatmul.mubr.msk.f32.gmra.mrb[12].mxu0 %vm287_vm4, %v6284_v1  ;;  %v253_v4 = vmax.f32 %v6161_v32, %v173_v29  ;;  %v252_v5 = vmax.f32 %v6166_v33, %v171_v3  ;;  %v6307_v33 = vld [vmem:[#allocation2 + $0x10] sm:$0xff] }
  0xae   :  { %v6358_v19 = vld [vmem:[#allocation2 + $0xf0] sm:$0xff] }
  0xaf   :  { %v277_v30 = vmax.f32 %v252_v5, %v253_v4  ;;  %v6427_v56 = vld [vmem:[#allocation2 + $0xf2] sm:$0xff]  ;;  %v4656_v4 = vld [vmem:[%s7201_s1 + $0x20] sm:$0xf] }
  0xb0   :  { %v6291_v6 = vld [vmem:[#allocation2 + $0x101] sm:$0xff]  ;;  %v205_v31 = vpop.permute.xlu1 %204  ;;  %v203_v7 = vpop.permute.xlu0 %202  ;;  %v6561_v5 = vld [vmem:[#allocation2 + $0x90] sm:$0xff] }
  0xb1   :  { %5159 = vmatprep.mubr.msk.f32.mxu0 %vm287_vm4, %v6291_v6  ;;  %295 = vst.msk [vmem:[#allocation2 + $0x81] sm:$0xff] %vm287_vm4, %v277_v30  ;;  %v269_v9 = vmax.f32 %v6175_v34, %v205_v31  ;;  %v268_v10 = vmax.f32 %v6180_v35, %v203_v7  ;;  %v4566_v34 = vld [vmem:[%s7201_s1 + $0xc] sm:$0xf]  ;;  %v6314_v35 = vld [vmem:[#allocation2 + $0x20] sm:$0xff]  ;;  %v6578_v30 = vld [vmem:[#allocation2 + $0x130] sm:$0xff] }
  0xb2   :  { %v6362_v42 = vld [vmem:[#allocation2 + $0x100] sm:$0xff] }
  0xb3   :  { %v285_v12 = vmax.f32 %v268_v10, %v269_v9  ;;  %v6431_v57 = vld [vmem:[#allocation2 + $0x102] sm:$0xff] }
  0xb4   :  { %v6300_v32 = vld [vmem:[#allocation2 + $0x111] sm:$0xff] }
  0xb5   :  { %5160 = vmatmul.mubr.msk.f32.gmra.mrb[14].mxu0 %vm287_vm4, %v6300_v32  ;;  %303 = vst.msk [vmem:[#allocation2 + $0x121] sm:$0xff] %vm287_vm4, %v285_v12  ;;  %v6368_v45 = vld [vmem:[#allocation2 + $0x110] sm:$0xff] }
  0xb6   :  { %5164 = vmatprep.mubr.msk.f32.mxu0 %vm287_vm4, %v6298_v11  ;;  %v6435_v26 = vld [vmem:[#allocation2 + $0x112] sm:$0xff] }
  0xb8   :  { %v969_v27 = vld [vmem:[#allocation2 + $0x80] sm:$0xff] }
  0xb9   :  { %5165 = vmatmul.mubr.msk.f32.vlgmr.msra.gmra.mrb[0].mxu0 %vm287_vm4, %v6307_v33  ;;  %v1429_v29 = vld [vmem:[#allocation2 + $0x82] sm:$0xff] }
  0xba   :  { %5189 = vmatpush3.msk.msra.mxu0 %vm387_vm3, %v6204_v60  ;;  %5167 = vmatprep.mubr.msk.f32.mxu0 %vm287_vm4, %v6314_v35  ;;  %v6333_v60 = vld [vmem:[#allocation2 + $0x60] sm:$0xff] }
  0xbb   :  { %5214 = vmatprep.subr.msk.mxu0 %vm387_vm3, %v4566_v34 }
  0xbc   :  { %v977_v63 = vld [vmem:[#allocation2 + $0x120] sm:$0xff] }
  0xbd   :  { %5168 = vmatmul.mubr.msk.f32.gmra.mrb[2].mxu0 %vm287_vm4, %v6321_v13  ;;  %v1207_v28 = vld [vmem:[#allocation2 + $0x121] sm:$0xff] }
  0xbe   :  { %5170 = vmatprep.mubr.msk.f32.mxu0 %vm287_vm4, %v6325_v17  ;;  %v1437_v3 = vld [vmem:[#allocation2 + $0x122] sm:$0xff] }
  0xc1   :  { %5171 = vmatmul.mubr.msk.f32.gmra.mrb[4].mxu0 %vm287_vm4, %v6329_v36 }
  0xc2   :  { %5173 = vmatprep.mubr.msk.f32.mxu0 %vm287_vm4, %v6333_v60 }
  0xc5   :  { %5174 = vmatmul.mubr.msk.f32.gmra.mrb[6].mxu0 %vm287_vm4, %v6339_v37 }
  0xc6   :  { %5176 = vmatprep.mubr.msk.f32.mxu0 %vm287_vm4, %v6337_v15 }
  0xc9   :  { %5177 = vmatmul.mubr.msk.f32.gmra.mrb[8].mxu0 %vm287_vm4, %v313_v16 }
  0xca   :  { %5179 = vmatprep.mubr.msk.f32.mxu0 %vm287_vm4, %v6346_v39 }
  0xcd   :  { %5180 = vmatmul.mubr.msk.f32.gmra.mrb[10].mxu0 %vm287_vm4, %v6350_v40 }
  0xce   :  { %5182 = vmatprep.mubr.msk.f32.mxu0 %vm287_vm4, %v6354_v18 }
  0xd1   :  { %5183 = vmatmul.mubr.msk.f32.gmra.mrb[12].mxu0 %vm287_vm4, %v6358_v19 }
  0xd2   :  { %5185 = vmatprep.mubr.msk.f32.mxu0 %vm287_vm4, %v6362_v42 }
  0xd5   :  { %5186 = vmatmul.mubr.msk.f32.gmra.mrb[14].mxu0 %vm287_vm4, %v6368_v45 }
  0xd6   :  { %5190 = vmatprep.mubr.msk.f32.mxu0 %vm287_vm4, %v6366_v44 }
  0xd9   :  { %5191 = vmatmul.mubr.msk.f32.vlgmr.msra.gmra.mrb[0].mxu0 %vm287_vm4, %v6374_v20 }
  0xda   :  { %5215 = vmatpush3.msk.msra.mxu0 %vm387_vm3, %v4566_v34  ;;  %5193 = vmatprep.mubr.msk.f32.mxu0 %vm287_vm4, %v6381_v46 }
  0xdb   :  { %5240 = vmatprep.subr.msk.mxu0 %vm387_vm3, %v4584_v21 }
  0xdd   :  { %5194 = vmatmul.mubr.msk.f32.gmra.mrb[2].mxu0 %vm287_vm4, %v6387_v48 }
  0xde   :  { %5196 = vmatprep.mubr.msk.f32.mxu0 %vm287_vm4, %v6391_v49 }
  0xe1   :  { %5197 = vmatmul.mubr.msk.f32.gmra.mrb[4].mxu0 %vm287_vm4, %v6395_v22 }
  0xe2   :  { %5199 = vmatprep.mubr.msk.f32.mxu0 %vm287_vm4, %v6399_v23 }
  0xe5   :  { %5200 = vmatmul.mubr.msk.f32.gmra.mrb[6].mxu0 %vm287_vm4, %v6405_v52 }
  0xe6   :  { %5202 = vmatprep.mubr.msk.f32.mxu0 %vm287_vm4, %v6403_v50 }
  0xe9   :  { %5203 = vmatmul.mubr.msk.f32.gmra.mrb[8].mxu0 %vm287_vm4, %v6411_v53 }
  0xea   :  { %5205 = vmatprep.mubr.msk.f32.mxu0 %vm287_vm4, %v6415_v24 }
  0xed   :  { %5206 = vmatmul.mubr.msk.f32.gmra.mrb[10].mxu0 %vm287_vm4, %v6419_v54 }
  0xee   :  { %5208 = vmatprep.mubr.msk.f32.mxu0 %vm287_vm4, %v6423_v25 }
  0xf1   :  { %5209 = vmatmul.mubr.msk.f32.gmra.mrb[12].mxu0 %vm287_vm4, %v6427_v56 }
  0xf2   :  { %5211 = vmatprep.mubr.msk.f32.mxu0 %vm287_vm4, %v6431_v57 }
  0xf5   :  { %5212 = vmatmul.mubr.msk.f32.gmra.mrb[14].mxu0 %vm287_vm4, %v6435_v26 }
  0xf6   :  { %5216 = vmatprep.mubr.msk.f32.mxu0 %vm287_vm4, %v6307_v33 }
  0xf9   :  { %5217 = vmatmul.mubr.msk.f32.vlgmr.msra.gmra.mrb[0].mxu0 %vm287_vm4, %v6314_v35 }
  0xfa   :  { %5241 = vmatpush3.msk.msra.mxu0 %vm387_vm3, %v4584_v21  ;;  %5219 = vmatprep.mubr.msk.f32.mxu0 %vm287_vm4, %v6321_v13 }
  0xfb   :  { %5266 = vmatprep.subr.msk.mxu0 %vm387_vm3, %v4602_v61 }
  0xfd   :  { %5220 = vmatmul.mubr.msk.f32.gmra.mrb[2].mxu0 %vm287_vm4, %v6325_v17 }
  0xfe   :  { %5222 = vmatprep.mubr.msk.f32.mxu0 %vm287_vm4, %v6329_v36 }
 0x101   :  { %5223 = vmatmul.mubr.msk.f32.gmra.mrb[4].mxu0 %vm287_vm4, %v6333_v60 }
 0x102   :  { %5225 = vmatprep.mubr.msk.f32.mxu0 %vm287_vm4, %v6339_v37 }
 0x105   :  { %5226 = vmatmul.mubr.msk.f32.gmra.mrb[6].mxu0 %vm287_vm4, %v969_v27 }
 0x106   :  { %5228 = vmatprep.mubr.msk.f32.mxu0 %vm287_vm4, %v313_v16 }
 0x109   :  { %5229 = vmatmul.mubr.msk.f32.gmra.mrb[8].mxu0 %vm287_vm4, %v6346_v39 }
 0x10a   :  { %5231 = vmatprep.mubr.msk.f32.mxu0 %vm287_vm4, %v6350_v40 }
 0x10d   :  { %5232 = vmatmul.mubr.msk.f32.gmra.mrb[10].mxu0 %vm287_vm4, %v6354_v18 }
 0x10e   :  { %5234 = vmatprep.mubr.msk.f32.mxu0 %vm287_vm4, %v6358_v19 }
 0x111   :  { %5235 = vmatmul.mubr.msk.f32.gmra.mrb[12].mxu0 %vm287_vm4, %v6362_v42 }
 0x112   :  { %5237 = vmatprep.mubr.msk.f32.mxu0 %vm287_vm4, %v6368_v45 }
 0x115   :  { %5238 = vmatmul.mubr.msk.f32.gmra.mrb[14].mxu0 %vm287_vm4, %v977_v63 }
 0x116   :  { %5242 = vmatprep.mubr.msk.f32.mxu0 %vm287_vm4, %v6197_v58  ;;  %v1199_v58 = vld [vmem:[#allocation2 + $0x81] sm:$0xff] }
 0x119   :  { %5243 = vmatmul.mubr.msk.f32.vlgmr.msra.gmra.mrb[0].mxu0 %vm287_vm4, %v6199_v59 }
 0x11a   :  { %5267 = vmatpush3.msk.msra.mxu0 %vm387_vm3, %v4602_v61  ;;  %5245 = vmatprep.mubr.msk.f32.mxu0 %vm287_vm4, %v6217_v2 }
 0x11b   :  { %5292 = vmatprep.subr.msk.mxu0 %vm387_vm3, %v4620_v0 }
 0x11d   :  { %5246 = vmatmul.mubr.msk.f32.gmra.mrb[2].mxu0 %vm287_vm4, %v6224_v8 }
 0x11e   :  { %5248 = vmatprep.mubr.msk.f32.mxu0 %vm287_vm4, %v6231_v14 }
 0x121   :  { %5249 = vmatmul.mubr.msk.f32.gmra.mrb[4].mxu0 %vm287_vm4, %v6238_v38 }
 0x122   :  { %5251 = vmatprep.mubr.msk.f32.mxu0 %vm287_vm4, %v6247_v43 }
 0x125   :  { %5252 = vmatmul.mubr.msk.f32.gmra.mrb[6].mxu0 %vm287_vm4, %v1199_v58 }
 0x126   :  { %5254 = vmatprep.mubr.msk.f32.mxu0 %vm287_vm4, %v6256_v47  ;;  %v4638_v47 = vld [vmem:[%s7201_s1 + $0x1c] sm:$0xf] }
 0x129   :  { %5255 = vmatmul.mubr.msk.f32.gmra.mrb[8].mxu0 %vm287_vm4, %v6263_v51 }
 0x12a   :  { %5257 = vmatprep.mubr.msk.f32.mxu0 %vm287_vm4, %v6270_v55 }
 0x12d   :  { %5258 = vmatmul.mubr.msk.f32.gmra.mrb[10].mxu0 %vm287_vm4, %v6277_v62 }
 0x12e   :  { %5260 = vmatprep.mubr.msk.f32.mxu0 %vm287_vm4, %v6284_v1 }
 0x131   :  { %5261 = vmatmul.mubr.msk.f32.gmra.mrb[12].mxu0 %vm287_vm4, %v6291_v6 }
 0x132   :  { %5263 = vmatprep.mubr.msk.f32.mxu0 %vm287_vm4, %v6300_v32 }
 0x135   :  { %5264 = vmatmul.mubr.msk.f32.gmra.mrb[14].mxu0 %vm287_vm4, %v1207_v28 }
 0x136   :  { %5268 = vmatprep.mubr.msk.f32.mxu0 %vm287_vm4, %v6374_v20 }
 0x139   :  { %5269 = vmatmul.mubr.msk.f32.vlgmr.msra.gmra.mrb[0].mxu0 %vm287_vm4, %v6381_v46 }
 0x13a   :  { %5293 = vmatpush3.msk.msra.mxu0 %vm387_vm3, %v4620_v0  ;;  %5271 = vmatprep.mubr.msk.f32.mxu0 %vm287_vm4, %v6387_v48 }
 0x13b   :  { %5318 = vmatprep.subr.msk.mxu0 %vm387_vm3, %v4638_v47 }
 0x13d   :  { %5272 = vmatmul.mubr.msk.f32.gmra.mrb[2].mxu0 %vm287_vm4, %v6391_v49 }
 0x13e   :  { %5274 = vmatprep.mubr.msk.f32.mxu0 %vm287_vm4, %v6395_v22 }
 0x141   :  { %5275 = vmatmul.mubr.msk.f32.gmra.mrb[4].mxu0 %vm287_vm4, %v6399_v23 }
 0x142   :  { %5277 = vmatprep.mubr.msk.f32.mxu0 %vm287_vm4, %v6405_v52 }
 0x145   :  { %5278 = vmatmul.mubr.msk.f32.gmra.mrb[6].mxu0 %vm287_vm4, %v1429_v29 }
 0x146   :  { %5280 = vmatprep.mubr.msk.f32.mxu0 %vm287_vm4, %v6411_v53 }
 0x149   :  { %5281 = vmatmul.mubr.msk.f32.gmra.mrb[8].mxu0 %vm287_vm4, %v6415_v24 }
 0x14a   :  { %5283 = vmatprep.mubr.msk.f32.mxu0 %vm287_vm4, %v6419_v54 }
 0x14d   :  { %5284 = vmatmul.mubr.msk.f32.gmra.mrb[10].mxu0 %vm287_vm4, %v6423_v25 }
 0x14e   :  { %5286 = vmatprep.mubr.msk.f32.mxu0 %vm287_vm4, %v6427_v56 }
 0x151   :  { %5287 = vmatmul.mubr.msk.f32.gmra.mrb[12].mxu0 %vm287_vm4, %v6431_v57 }
 0x152   :  { %5289 = vmatprep.mubr.msk.f32.mxu0 %vm287_vm4, %v6435_v26 }
 0x155   :  { %5290 = vmatmul.mubr.msk.f32.gmra.mrb[14].mxu0 %vm287_vm4, %v1437_v3 }
 0x156   :  { %5294 = vmatprep.mubr.msk.f32.mxu0 %vm287_vm4, %v6314_v35 }
 0x159   :  { %5295 = vmatmul.mubr.msk.f32.vlgmr.msra.gmra.mrb[0].mxu0 %vm287_vm4, %v6321_v13 }
 0x15a   :  { %5319 = vmatpush3.msk.msra.mxu0 %vm387_vm3, %v4638_v47  ;;  %5297 = vmatprep.mubr.msk.f32.mxu0 %vm287_vm4, %v6325_v17 }
 0x15b   :  { %5344 = vmatprep.subr.msk.mxu0 %vm387_vm3, %v4656_v4 }
 0x15d   :  { %5298 = vmatmul.mubr.msk.f32.gmra.mrb[2].mxu0 %vm287_vm4, %v6329_v36 }
 0x15e   :  { %5300 = vmatprep.mubr.msk.f32.mxu0 %vm287_vm4, %v6333_v60 }
 0x161   :  { %5301 = vmatmul.mubr.msk.f32.gmra.mrb[4].mxu0 %vm287_vm4, %v6339_v37 }
 0x162   :  { %5303 = vmatprep.mubr.msk.f32.mxu0 %vm287_vm4, %v969_v27 }
 0x165   :  { %5304 = vmatmul.mubr.msk.f32.gmra.mrb[6].mxu0 %vm287_vm4, %v6561_v5 }
 0x166   :  { %5306 = vmatprep.mubr.msk.f32.mxu0 %vm287_vm4, %v6346_v39 }
 0x169   :  { %5307 = vmatmul.mubr.msk.f32.gmra.mrb[8].mxu0 %vm287_vm4, %v6350_v40 }
 0x16a   :  { %5309 = vmatprep.mubr.msk.f32.mxu0 %vm287_vm4, %v6354_v18 }
 0x16d   :  { %5310 = vmatmul.mubr.msk.f32.gmra.mrb[10].mxu0 %vm287_vm4, %v6358_v19 }
 0x16e   :  { %5312 = vmatprep.mubr.msk.f32.mxu0 %vm287_vm4, %v6362_v42 }
 0x171   :  { %5313 = vmatmul.mubr.msk.f32.gmra.mrb[12].mxu0 %vm287_vm4, %v6368_v45 }
 0x172   :  { %5315 = vmatprep.mubr.msk.f32.mxu0 %vm287_vm4, %v977_v63 }
 0x175   :  { %5316 = vmatmul.mubr.msk.f32.gmra.mrb[14].mxu0 %vm287_vm4, %v6578_v30 }
 0x176   :  { %5320 = vmatprep.mubr.msk.f32.mxu0 %vm287_vm4, %v6199_v59  ;;  %v6596_v59 = vld [vmem:[#allocation2 + $0x91] sm:$0xff] }
 0x179   :  { %5321 = vmatmul.mubr.msk.f32.vlgmr.msra.gmra.mrb[0].mxu0 %vm287_vm4, %v6217_v2  ;;  %v6613_v2 = vld [vmem:[#allocation2 + $0x131] sm:$0xff] }
 0x17a   :  { %5345 = vmatpush3.msk.msra.mxu0 %vm387_vm3, %v4656_v4  ;;  %5323 = vmatprep.mubr.msk.f32.mxu0 %vm287_vm4, %v6224_v8  ;;  %v6630_v8 = vld [vmem:[#allocation2 + $0x92] sm:$0xff] }
 0x17d   :  { %5324 = vmatmul.mubr.msk.f32.gmra.mrb[2].mxu0 %vm287_vm4, %v6231_v14  ;;  %v6647_v14 = vld [vmem:[#allocation2 + $0x132] sm:$0xff] }
 0x17e   :  { %5326 = vmatprep.mubr.msk.f32.mxu0 %vm287_vm4, %v6238_v38  ;;  %v4676_v38 = vld [vmem:[%s7202_s4 + $0x8] sm:$0xff] }
 0x17f   :  { %5370 = vmatprep.subr.mxu1 %v4676_v38 }
 0x180   :  { %5371 = vmatpush3.msra.mxu1 %v4676_v38 }
 0x181   :  { %5327 = vmatmul.mubr.msk.f32.gmra.mrb[4].mxu0 %vm287_vm4, %v6247_v43  ;;  %v2437_v43 = vld [vmem:[%s7202_s4] sm:$0xff] }
 0x182   :  { %5329 = vmatprep.mubr.msk.f32.mxu0 %vm287_vm4, %v1199_v58  ;;  %5396 = vmatprep.subr.mxu1 %v2437_v43 }
 0x185   :  { %5330 = vmatmul.mubr.msk.f32.gmra.mrb[6].mxu0 %vm287_vm4, %v6596_v59 }
 0x186   :  { %5332 = vmatprep.mubr.msk.f32.mxu0 %vm287_vm4, %v6263_v51  ;;  %v6660_v51 = vld [vmem:[%s7203_s2] ss:$0 sm:$0xff] }
 0x189   :  { %5333 = vmatmul.mubr.msk.f32.gmra.mrb[8].mxu0 %vm287_vm4, %v6270_v55 }
 0x18a   :  { %5335 = vmatprep.mubr.msk.f32.mxu0 %vm287_vm4, %v6277_v62  ;;  %v6665_v62 = vld [vmem:[%s7204_s3] ss:$0 sm:$0xff] }
 0x18d   :  { %5336 = vmatmul.mubr.msk.f32.gmra.mrb[10].mxu0 %vm287_vm4, %v6284_v1 }
 0x18e   :  { %5338 = vmatprep.mubr.msk.f32.mxu0 %vm287_vm4, %v6291_v6 }
 0x191   :  { %5339 = vmatmul.mubr.msk.f32.gmra.mrb[12].mxu0 %vm287_vm4, %v6300_v32 }
 0x192   :  { %5341 = vmatprep.mubr.msk.f32.mxu0 %vm287_vm4, %v1207_v28 }
 0x195   :  { %5342 = vmatmul.mubr.msk.f32.gmra.mrb[14].mxu0 %vm287_vm4, %v6613_v2 }
 0x196   :  { %5346 = vmatprep.mubr.msk.f32.mxu0 %vm287_vm4, %v6381_v46 }
 0x199   :  { %5347 = vmatmul.mubr.msk.f32.vlgmr.msra.gmra.mrb[0].mxu0 %vm287_vm4, %v6387_v48 }
 0x19a   :  { %5349 = vmatprep.mubr.msk.f32.mxu0 %vm287_vm4, %v6391_v49 }
 0x19d   :  { %5350 = vmatmul.mubr.msk.f32.gmra.mrb[2].mxu0 %vm287_vm4, %v6395_v22 }
 0x19e   :  { %5352 = vmatprep.mubr.msk.f32.mxu0 %vm287_vm4, %v6399_v23  ;;  %v6692_v23 = vld [vmem:[%s7202_s4 + $0x10] sm:$0xff] }
 0x1a1   :  { %5353 = vmatmul.mubr.msk.f32.gmra.mrb[4].mxu0 %vm287_vm4, %v6405_v52 }
 0x1a2   :  { %5355 = vmatprep.mubr.msk.f32.mxu0 %vm287_vm4, %v1429_v29 }
 0x1a5   :  { %5356 = vmatmul.mubr.msk.f32.gmra.mrb[6].mxu0 %vm287_vm4, %v6630_v8 }
 0x1a6   :  { %5358 = vmatprep.mubr.msk.f32.mxu0 %vm287_vm4, %v6415_v24 }
 0x1a9   :  { %5359 = vmatmul.mubr.msk.f32.gmra.mrb[8].mxu0 %vm287_vm4, %v6419_v54 }
 0x1aa   :  { %5361 = vmatprep.mubr.msk.f32.mxu0 %vm287_vm4, %v6423_v25 }
 0x1ad   :  { %5362 = vmatmul.mubr.msk.f32.gmra.mrb[10].mxu0 %vm287_vm4, %v6427_v56 }
 0x1ae   :  { %5364 = vmatprep.mubr.msk.f32.mxu0 %vm287_vm4, %v6431_v57 }
 0x1b1   :  { %5365 = vmatmul.mubr.msk.f32.gmra.mrb[12].mxu0 %vm287_vm4, %v6435_v26 }
 0x1b2   :  { %5367 = vmatprep.mubr.msk.f32.mxu0 %vm287_vm4, %v1437_v3 }
 0x1b5   :  { %5368 = vmatmul.mubr.msk.f32.gmra.mrb[14].mxu0 %vm287_vm4, %v6647_v14 }
 0x26c   :  { %v5348_v55 = vpop.f32.mrb[0].mxu0 }
 0x26d   :  { %v2351_v1 = vmul.f32 %v5348_v55, %v6660_v51  ;;  %v2248_v6 = vpop.f32.mrb[1].mxu0 }
 0x26e   :  { %v2350_v31 = vmul.f32 %v6660_v51, %v2248_v6 }
 0x26f   :  { %v2374_v7 = vadd.f32 %v6665_v62, %v2351_v1 }
 0x270   :  { %v2373_v9 = vadd.f32 %v6665_v62, %v2350_v31  ;;  %v5351_v10 = vpop.f32.mrb[2].mxu0 }
 0x271   :  { %v2390_v12 = vmax.f32 %v2374_v7, 0.0  ;;  %v2353_v32 = vmul.f32 %v5351_v10, %v6660_v51  ;;  %v2258_v33 = vpop.f32.mrb[3].mxu0 }
 0x272   :  { %v2389_v34 = vmax.f32 %v2373_v9, 0.0  ;;  %v2352_v35 = vmul.f32 %v6660_v51, %v2258_v33 }
 0x273   :  { %2406 = vst.msk [vmem:[#allocation2 + $0x21] sm:$0xff] %vm26_vm0, %v2390_v12  ;;  %v2376_v13 = vadd.f32 %v6665_v62, %v2353_v32 }
 0x274   :  { %2405 = vst.msk [vmem:[#allocation2 + $0x11] sm:$0xff] %vm26_vm0, %v2389_v34  ;;  %v2375_v17 = vadd.f32 %v6665_v62, %v2352_v35  ;;  %v5354_v36 = vpop.f32.mrb[4].mxu0 }
 0x275   :  { %v2392_v60 = vmax.f32 %v2376_v13, 0.0  ;;  %v2355_v37 = vmul.f32 %v5354_v36, %v6660_v51  ;;  %v2268_v16 = vpop.f32.mrb[5].mxu0 }
 0x276   :  { %v2391_v39 = vmax.f32 %v2375_v17, 0.0  ;;  %v2354_v40 = vmul.f32 %v6660_v51, %v2268_v16 }
 0x277   :  { %2408 = vst.msk [vmem:[#allocation2 + $0x41] sm:$0xff] %vm26_vm0, %v2392_v60  ;;  %v2378_v18 = vadd.f32 %v6665_v62, %v2355_v37 }
 0x278   :  { %2407 = vst.msk [vmem:[#allocation2 + $0x31] sm:$0xff] %vm26_vm0, %v2391_v39  ;;  %v2377_v19 = vadd.f32 %v6665_v62, %v2354_v40  ;;  %v5357_v42 = vpop.f32.mrb[6].mxu0 }
 0x279   :  { %v2394_v45 = vmax.f32 %v2378_v18, 0.0  ;;  %v2357_v20 = vmul.f32 %v5357_v42, %v6660_v51  ;;  %v2278_v21 = vpop.f32.mrb[7].mxu0 }
 0x27a   :  { %v2393_v46 = vmax.f32 %v2377_v19, 0.0  ;;  %v2356_v48 = vmul.f32 %v6660_v51, %v2278_v21  ;;  %v6698_v24 = vld [vmem:[#allocation2 + $0x21] sm:$0xff] }
 0x27b   :  { %2410 = vst.msk [vmem:[#allocation2 + $0x61] sm:$0xff] %vm26_vm0, %v2394_v45  ;;  %v2380_v49 = vadd.f32 %v6665_v62, %v2357_v20  ;;  %v6687_v22 = vld [vmem:[#allocation2 + $0x11] sm:$0xff] }
 0x27c   :  { %2409 = vst.msk [vmem:[#allocation2 + $0x51] sm:$0xff] %vm26_vm0, %v2393_v46  ;;  %v2379_v52 = vadd.f32 %v6665_v62, %v2356_v48  ;;  %v5360_v53 = vpop.f32.mrb[8].mxu0  ;;  %5373 = vmatmul.mubr.msk.f32.vlgmr.msra.gmra.mrb[0].mxu1 %vm26_vm0, %v6687_v22  ;;  %v6781_v21 = vld [vmem:[#allocation2 + $0x10] sm:$0xff]  ;;  %v4726_v46 = vld [vmem:[%s7202_s4 + $0x18] sm:$0xff]  ;;  %v6788_v48 = vld [vmem:[#allocation2 + $0x20] sm:$0xff] }
 0x27d   :  { %v2396_v54 = vmax.f32 %v2380_v49, 0.0  ;;  %v2359_v25 = vmul.f32 %v5360_v53, %v6660_v51  ;;  %5397 = vmatpush3.msra.mxu1 %v2437_v43  ;;  %v2288_v56 = vpop.f32.mrb[9].mxu0  ;;  %5375 = vmatprep.mubr.msk.f32.mxu1 %vm26_vm0, %v6698_v24 }
 0x27e   :  { %v2395_v57 = vmax.f32 %v2379_v52, 0.0  ;;  %v2358_v26 = vmul.f32 %v6660_v51, %v2288_v56  ;;  %5422 = vmatprep.subr.mxu1 %v6692_v23  ;;  %v6713_v58 = vld [vmem:[#allocation2 + $0x41] sm:$0xff] }
 0x27f   :  { %2412 = vst.msk [vmem:[#allocation2 + $0x81] sm:$0xff] %vm26_vm0, %v2396_v54  ;;  %v2382_v61 = vadd.f32 %v6665_v62, %v2359_v25  ;;  %v6707_v27 = vld [vmem:[#allocation2 + $0x31] sm:$0xff] }
 0x280   :  { %2411 = vst.msk [vmem:[#allocation2 + $0x71] sm:$0xff] %vm26_vm0, %v2395_v57  ;;  %v2381_v63 = vadd.f32 %v6665_v62, %v2358_v26  ;;  %v5363_v0 = vpop.f32.mrb[10].mxu0  ;;  %5376 = vmatmul.mubr.msk.f32.gmra.mrb[2].mxu1 %vm26_vm0, %v6707_v27  ;;  %v6793_v49 = vld [vmem:[#allocation2 + $0x30] sm:$0xff] }
 0x281   :  { %v2398_v28 = vmax.f32 %v2382_v61, 0.0  ;;  %v2361_v47 = vmul.f32 %v5363_v0, %v6660_v51  ;;  %v2298_v29 = vpop.f32.mrb[11].mxu0  ;;  %5378 = vmatprep.mubr.msk.f32.mxu1 %vm26_vm0, %v6713_v58  ;;  %v4743_v0 = vld [vmem:[%s7202_s4 + $0x20] sm:$0xff] }
 0x282   :  { %v2397_v3 = vmax.f32 %v2381_v63, 0.0  ;;  %v2360_v4 = vmul.f32 %v6660_v51, %v2298_v29  ;;  %v6727_v6 = vld [vmem:[#allocation2 + $0x61] sm:$0xff]  ;;  %v6842_v63 = vld [vmem:[#allocation2 + $0x12] sm:$0xff] }
 0x283   :  { %2414 = vst.msk [vmem:[#allocation2 + $0xc1] sm:$0xff] %vm26_vm0, %v2398_v28  ;;  %v2384_v38 = vadd.f32 %v6665_v62, %v2361_v47  ;;  %v6721_v43 = vld [vmem:[#allocation2 + $0x51] sm:$0xff]  ;;  %v6849_v28 = vld [vmem:[#allocation2 + $0x22] sm:$0xff] }
 0x284   :  { %2413 = vst.msk [vmem:[#allocation2 + $0xb1] sm:$0xff] %vm26_vm0, %v2397_v3  ;;  %v2383_v55 = vadd.f32 %v6665_v62, %v2360_v4  ;;  %v5366_v1 = vpop.f32.mrb[12].mxu0  ;;  %5379 = vmatmul.mubr.msk.f32.gmra.mrb[4].mxu1 %vm26_vm0, %v6721_v43  ;;  %v6801_v52 = vld [vmem:[#allocation2 + $0x50] sm:$0xff]  ;;  %v6865_v3 = vld [vmem:[#allocation2 + $0x62] sm:$0xff] }
 0x285   :  { %v2400_v31 = vmax.f32 %v2384_v38, 0.0  ;;  %v2363_v7 = vmul.f32 %v5366_v1, %v6660_v51  ;;  %v2308_v9 = vpop.f32.mrb[13].mxu0  ;;  %5381 = vmatprep.mubr.msk.f32.mxu1 %vm26_vm0, %v6727_v6  ;;  %v6853_v47 = vld [vmem:[#allocation2 + $0x32] sm:$0xff] }
 0x286   :  { %v2399_v10 = vmax.f32 %v2383_v55, 0.0  ;;  %v2362_v12 = vmul.f32 %v6660_v51, %v2308_v9  ;;  %v6861_v29 = vld [vmem:[#allocation2 + $0x52] sm:$0xff] }
 0x287   :  { %2416 = vst.msk [vmem:[#allocation2 + $0xe1] sm:$0xff] %vm26_vm0, %v2400_v31  ;;  %v2386_v32 = vadd.f32 %v6665_v62, %v2363_v7  ;;  %v6735_v33 = vld [vmem:[#allocation2 + $0x71] sm:$0xff] }
 0x288   :  { %2415 = vst.msk [vmem:[#allocation2 + $0xd1] sm:$0xff] %vm26_vm0, %v2399_v10  ;;  %v2385_v34 = vadd.f32 %v6665_v62, %v2362_v12  ;;  %v5369_v35 = vpop.f32.mrb[14].mxu0  ;;  %5382 = vmatmul.mubr.msk.f32.gmra.mrb[6].mxu1 %vm26_vm0, %v6735_v33  ;;  %v6809_v53 = vld [vmem:[#allocation2 + $0x70] sm:$0xff]  ;;  %v4760_v10 = vld [vmem:[%s7202_s4 + $0x28] sm:$0xff]  ;;  %v3076_v12 = vld [vmem:[#allocation2 + $0x80] sm:$0xff] }
 0x289   :  { %v2402_v13 = vmax.f32 %v2386_v32, 0.0  ;;  %v2365_v17 = vmul.f32 %v5369_v35, %v6660_v51  ;;  %v2318_v36 = vpop.f32.mrb[15].mxu0  ;;  %5384 = vmatprep.mubr.msk.f32.mxu1 %vm26_vm0, %v6245_v41  ;;  %v6869_v4 = vld [vmem:[#allocation2 + $0x72] sm:$0xff] }
 0x28a   :  { %v2401_v60 = vmax.f32 %v2385_v34, 0.0  ;;  %v2364_v37 = vmul.f32 %v6660_v51, %v2318_v36  ;;  %v6753_v18 = vld [vmem:[#allocation2 + $0xc1] sm:$0xff]  ;;  %v4777_v34 = vld [vmem:[%s7202_s4 + $0x30] sm:$0xff] }
 0x28b   :  { %2418 = vst.msk [vmem:[#allocation2 + $0x101] sm:$0xff] %vm26_vm0, %v2402_v13  ;;  %v2388_v16 = vadd.f32 %v6665_v62, %v2365_v17  ;;  %v6747_v39 = vld [vmem:[#allocation2 + $0xb1] sm:$0xff]  ;;  %v6816_v25 = vld [vmem:[#allocation2 + $0xc0] sm:$0xff] }
 0x28c   :  { %2417 = vst.msk [vmem:[#allocation2 + $0xf1] sm:$0xff] %vm26_vm0, %v2401_v60  ;;  %v2387_v40 = vadd.f32 %v6665_v62, %v2364_v37  ;;  %5385 = vmatmul.mubr.msk.f32.gmra.mrb[8].mxu1 %vm26_vm0, %v6747_v39  ;;  %v2430_v54 = vld [vmem:[#allocation2 + $0xb0] sm:$0xff]  ;;  %v6879_v55 = vld [vmem:[#allocation2 + $0xc2] sm:$0xff]  ;;  %v4794_v13 = vld [vmem:[%s7202_s4 + $0x38] sm:$0xff] }
 0x28d   :  { %v2404_v19 = vmax.f32 %v2388_v16, 0.0  ;;  %5387 = vmatprep.mubr.msk.f32.mxu1 %vm26_vm0, %v6753_v18  ;;  %v6875_v38 = vld [vmem:[#allocation2 + $0xb2] sm:$0xff]  ;;  %v3530_v17 = vld [vmem:[#allocation2 + $0x82] sm:$0xff] }
 0x28e   :  { %v2403_v41 = vmax.f32 %v2387_v40, 0.0  ;;  %v6763_v62 = vld [vmem:[#allocation2 + $0xe1] sm:$0xff] }
 0x28f   :  { %2420 = vst.msk [vmem:[#allocation2 + $0x121] sm:$0xff] %vm26_vm0, %v2404_v19  ;;  %v6758_v51 = vld [vmem:[#allocation2 + $0xd1] sm:$0xff]  ;;  %v6824_v57 = vld [vmem:[#allocation2 + $0xe0] sm:$0xff] }
 0x290   :  { %2419 = vst.msk [vmem:[#allocation2 + $0x111] sm:$0xff] %vm26_vm0, %v2403_v41  ;;  %5388 = vmatmul.mubr.msk.f32.gmra.mrb[10].mxu1 %vm26_vm0, %v6758_v51  ;;  %v6820_v56 = vld [vmem:[#allocation2 + $0xd0] sm:$0xff]  ;;  %v6887_v31 = vld [vmem:[#allocation2 + $0xe2] sm:$0xff] }
 0x291   :  { %5390 = vmatprep.mubr.msk.f32.mxu1 %vm26_vm0, %v6763_v62  ;;  %v6883_v1 = vld [vmem:[#allocation2 + $0xd2] sm:$0xff]  ;;  %v4811_v60 = vld [vmem:[%s7202_s4 + $0x40] sm:$0xff] }
 0x292   :  { %v6771_v45 = vld [vmem:[#allocation2 + $0x101] sm:$0xff] }
 0x293   :  { %v6767_v42 = vld [vmem:[#allocation2 + $0xf1] sm:$0xff]  ;;  %v6895_v7 = vld [vmem:[#allocation2 + $0x102] sm:$0xff] }
 0x294   :  { %5391 = vmatmul.mubr.msk.f32.gmra.mrb[12].mxu1 %vm26_vm0, %v6767_v42  ;;  %v6828_v26 = vld [vmem:[#allocation2 + $0xf0] sm:$0xff] }
 0x295   :  { %5393 = vmatprep.mubr.msk.f32.mxu1 %vm26_vm0, %v6771_v45 }
 0x296   :  { %v3084_v32 = vld [vmem:[#allocation2 + $0x120] sm:$0xff] }
 0x297   :  { %v6775_v20 = vld [vmem:[#allocation2 + $0x111] sm:$0xff]  ;;  %v3311_v35 = vld [vmem:[#allocation2 + $0x121] sm:$0xff] }
 0x298   :  { %5394 = vmatmul.mubr.msk.f32.gmra.mrb[14].mxu1 %vm26_vm0, %v6775_v20  ;;  %v6836_v61 = vld [vmem:[#allocation2 + $0x110] sm:$0xff]  ;;  %v3538_v36 = vld [vmem:[#allocation2 + $0x122] sm:$0xff] }
 0x299   :  { %5398 = vmatprep.mubr.msk.f32.mxu1 %vm26_vm0, %v6298_v11  ;;  %v6797_v11 = vld [vmem:[#allocation2 + $0x40] sm:$0xff]  ;;  %v6899_v9 = vld [vmem:[#allocation2 + $0x112] sm:$0xff] }
 0x29c   :  { %5399 = vmatmul.mubr.msk.f32.vlgmr.msra.gmra.mrb[0].mxu1 %vm26_vm0, %v6781_v21 }
 0x29d   :  { %5423 = vmatpush3.msra.mxu1 %v6692_v23  ;;  %5401 = vmatprep.mubr.msk.f32.mxu1 %vm26_vm0, %v6788_v48  ;;  %v6805_v23 = vld [vmem:[#allocation2 + $0x60] sm:$0xff] }
 0x29e   :  { %5448 = vmatprep.subr.mxu1 %v4726_v46 }
 0x2a0   :  { %5402 = vmatmul.mubr.msk.f32.gmra.mrb[2].mxu1 %vm26_vm0, %v6793_v49 }
 0x2a1   :  { %5404 = vmatprep.mubr.msk.f32.mxu1 %vm26_vm0, %v6797_v11 }
 0x2a4   :  { %5405 = vmatmul.mubr.msk.f32.gmra.mrb[4].mxu1 %vm26_vm0, %v6801_v52 }
 0x2a5   :  { %5407 = vmatprep.mubr.msk.f32.mxu1 %vm26_vm0, %v6805_v23 }
 0x2a8   :  { %5408 = vmatmul.mubr.msk.f32.gmra.mrb[6].mxu1 %vm26_vm0, %v6809_v53 }
 0x2a9   :  { %5410 = vmatprep.mubr.msk.f32.mxu1 %vm26_vm0, %v6337_v15  ;;  %v6832_v15 = vld [vmem:[#allocation2 + $0x100] sm:$0xff] }
 0x2ac   :  { %5411 = vmatmul.mubr.msk.f32.gmra.mrb[8].mxu1 %vm26_vm0, %v2430_v54 }
 0x2ad   :  { %5413 = vmatprep.mubr.msk.f32.mxu1 %vm26_vm0, %v6816_v25 }
 0x2b0   :  { %5414 = vmatmul.mubr.msk.f32.gmra.mrb[10].mxu1 %vm26_vm0, %v6820_v56 }
 0x2b1   :  { %5416 = vmatprep.mubr.msk.f32.mxu1 %vm26_vm0, %v6824_v57 }
 0x2b4   :  { %5417 = vmatmul.mubr.msk.f32.gmra.mrb[12].mxu1 %vm26_vm0, %v6828_v26 }
 0x2b5   :  { %5419 = vmatprep.mubr.msk.f32.mxu1 %vm26_vm0, %v6832_v15 }
 0x2b8   :  { %5420 = vmatmul.mubr.msk.f32.gmra.mrb[14].mxu1 %vm26_vm0, %v6836_v61 }
 0x2b9   :  { %5424 = vmatprep.mubr.msk.f32.mxu1 %vm26_vm0, %v6366_v44  ;;  %v6857_v44 = vld [vmem:[#allocation2 + $0x42] sm:$0xff] }
 0x2bc   :  { %5425 = vmatmul.mubr.msk.f32.vlgmr.msra.gmra.mrb[0].mxu1 %vm26_vm0, %v6842_v63 }
 0x2bd   :  { %5449 = vmatpush3.msra.mxu1 %v4726_v46  ;;  %5427 = vmatprep.mubr.msk.f32.mxu1 %vm26_vm0, %v6849_v28 }
 0x2be   :  { %5474 = vmatprep.subr.mxu1 %v4743_v0 }
 0x2c0   :  { %5428 = vmatmul.mubr.msk.f32.gmra.mrb[2].mxu1 %vm26_vm0, %v6853_v47 }
 0x2c1   :  { %5430 = vmatprep.mubr.msk.f32.mxu1 %vm26_vm0, %v6857_v44 }
 0x2c4   :  { %5431 = vmatmul.mubr.msk.f32.gmra.mrb[4].mxu1 %vm26_vm0, %v6861_v29 }
 0x2c5   :  { %5433 = vmatprep.mubr.msk.f32.mxu1 %vm26_vm0, %v6865_v3 }
 0x2c8   :  { %5434 = vmatmul.mubr.msk.f32.gmra.mrb[6].mxu1 %vm26_vm0, %v6869_v4 }
 0x2c9   :  { %5436 = vmatprep.mubr.msk.f32.mxu1 %vm26_vm0, %v6403_v50  ;;  %v6891_v50 = vld [vmem:[#allocation2 + $0xf2] sm:$0xff] }
 0x2cc   :  { %5437 = vmatmul.mubr.msk.f32.gmra.mrb[8].mxu1 %vm26_vm0, %v6875_v38 }
 0x2cd   :  { %5439 = vmatprep.mubr.msk.f32.mxu1 %vm26_vm0, %v6879_v55 }
 0x2d0   :  { %5440 = vmatmul.mubr.msk.f32.gmra.mrb[10].mxu1 %vm26_vm0, %v6883_v1 }
 0x2d1   :  { %5442 = vmatprep.mubr.msk.f32.mxu1 %vm26_vm0, %v6887_v31 }
 0x2d4   :  { %5443 = vmatmul.mubr.msk.f32.gmra.mrb[12].mxu1 %vm26_vm0, %v6891_v50 }
 0x2d5   :  { %5445 = vmatprep.mubr.msk.f32.mxu1 %vm26_vm0, %v6895_v7 }
 0x2d8   :  { %5446 = vmatmul.mubr.msk.f32.gmra.mrb[14].mxu1 %vm26_vm0, %v6899_v9 }
 0x2d9   :  { %5450 = vmatprep.mubr.msk.f32.mxu1 %vm26_vm0, %v6781_v21 }
 0x2dc   :  { %5451 = vmatmul.mubr.msk.f32.vlgmr.msra.gmra.mrb[0].mxu1 %vm26_vm0, %v6788_v48 }
 0x2dd   :  { %5475 = vmatpush3.msra.mxu1 %v4743_v0  ;;  %5453 = vmatprep.mubr.msk.f32.mxu1 %vm26_vm0, %v6793_v49 }
 0x2de   :  { %5500 = vmatprep.subr.mxu1 %v4760_v10 }
 0x2e0   :  { %5454 = vmatmul.mubr.msk.f32.gmra.mrb[2].mxu1 %vm26_vm0, %v6797_v11 }
 0x2e1   :  { %5456 = vmatprep.mubr.msk.f32.mxu1 %vm26_vm0, %v6801_v52 }
 0x2e4   :  { %5457 = vmatmul.mubr.msk.f32.gmra.mrb[4].mxu1 %vm26_vm0, %v6805_v23 }
 0x2e5   :  { %5459 = vmatprep.mubr.msk.f32.mxu1 %vm26_vm0, %v6809_v53 }
 0x2e8   :  { %5460 = vmatmul.mubr.msk.f32.gmra.mrb[6].mxu1 %vm26_vm0, %v3076_v12 }
 0x2e9   :  { %5462 = vmatprep.mubr.msk.f32.mxu1 %vm26_vm0, %v2430_v54 }
 0x2ec   :  { %5463 = vmatmul.mubr.msk.f32.gmra.mrb[8].mxu1 %vm26_vm0, %v6816_v25 }
 0x2ed   :  { %5465 = vmatprep.mubr.msk.f32.mxu1 %vm26_vm0, %v6820_v56 }
 0x2f0   :  { %5466 = vmatmul.mubr.msk.f32.gmra.mrb[10].mxu1 %vm26_vm0, %v6824_v57 }
 0x2f1   :  { %5468 = vmatprep.mubr.msk.f32.mxu1 %vm26_vm0, %v6828_v26 }
 0x2f4   :  { %5469 = vmatmul.mubr.msk.f32.gmra.mrb[12].mxu1 %vm26_vm0, %v6832_v15 }
 0x2f5   :  { %5471 = vmatprep.mubr.msk.f32.mxu1 %vm26_vm0, %v6836_v61 }
 0x2f8   :  { %5472 = vmatmul.mubr.msk.f32.gmra.mrb[14].mxu1 %vm26_vm0, %v3084_v32 }
 0x2f9   :  { %5476 = vmatprep.mubr.msk.f32.mxu1 %vm26_vm0, %v6687_v22  ;;  %v3303_v22 = vld [vmem:[#allocation2 + $0x81] sm:$0xff] }
 0x2fc   :  { %5477 = vmatmul.mubr.msk.f32.vlgmr.msra.gmra.mrb[0].mxu1 %vm26_vm0, %v6698_v24 }
 0x2fd   :  { %5501 = vmatpush3.msra.mxu1 %v4760_v10  ;;  %5479 = vmatprep.mubr.msk.f32.mxu1 %vm26_vm0, %v6707_v27 }
 0x2fe   :  { %5526 = vmatprep.subr.mxu1 %v4777_v34 }
 0x300   :  { %5480 = vmatmul.mubr.msk.f32.gmra.mrb[2].mxu1 %vm26_vm0, %v6713_v58 }
 0x301   :  { %5482 = vmatprep.mubr.msk.f32.mxu1 %vm26_vm0, %v6721_v43 }
 0x304   :  { %5483 = vmatmul.mubr.msk.f32.gmra.mrb[4].mxu1 %vm26_vm0, %v6727_v6 }
 0x305   :  { %5485 = vmatprep.mubr.msk.f32.mxu1 %vm26_vm0, %v6735_v33 }
 0x308   :  { %5486 = vmatmul.mubr.msk.f32.gmra.mrb[6].mxu1 %vm26_vm0, %v3303_v22 }
 0x309   :  { %5488 = vmatprep.mubr.msk.f32.mxu1 %vm26_vm0, %v6747_v39 }
 0x30c   :  { %5489 = vmatmul.mubr.msk.f32.gmra.mrb[8].mxu1 %vm26_vm0, %v6753_v18 }
 0x30d   :  { %5491 = vmatprep.mubr.msk.f32.mxu1 %vm26_vm0, %v6758_v51 }
 0x310   :  { %5492 = vmatmul.mubr.msk.f32.gmra.mrb[10].mxu1 %vm26_vm0, %v6763_v62 }
 0x311   :  { %5494 = vmatprep.mubr.msk.f32.mxu1 %vm26_vm0, %v6767_v42 }
 0x314   :  { %5495 = vmatmul.mubr.msk.f32.gmra.mrb[12].mxu1 %vm26_vm0, %v6771_v45 }
 0x315   :  { %5497 = vmatprep.mubr.msk.f32.mxu1 %vm26_vm0, %v6775_v20 }
 0x318   :  { %5498 = vmatmul.mubr.msk.f32.gmra.mrb[14].mxu1 %vm26_vm0, %v3311_v35 }
 0x319   :  { %5502 = vmatprep.mubr.msk.f32.mxu1 %vm26_vm0, %v6842_v63 }
 0x31c   :  { %5503 = vmatmul.mubr.msk.f32.vlgmr.msra.gmra.mrb[0].mxu1 %vm26_vm0, %v6849_v28 }
 0x31d   :  { %5527 = vmatpush3.msra.mxu1 %v4777_v34  ;;  %5505 = vmatprep.mubr.msk.f32.mxu1 %vm26_vm0, %v6853_v47 }
 0x31e   :  { %5552 = vmatprep.subr.mxu1 %v4794_v13 }
 0x320   :  { %5506 = vmatmul.mubr.msk.f32.gmra.mrb[2].mxu1 %vm26_vm0, %v6857_v44 }
 0x321   :  { %5508 = vmatprep.mubr.msk.f32.mxu1 %vm26_vm0, %v6861_v29 }
 0x324   :  { %5509 = vmatmul.mubr.msk.f32.gmra.mrb[4].mxu1 %vm26_vm0, %v6865_v3 }
 0x325   :  { %5511 = vmatprep.mubr.msk.f32.mxu1 %vm26_vm0, %v6869_v4 }
 0x328   :  { %5512 = vmatmul.mubr.msk.f32.gmra.mrb[6].mxu1 %vm26_vm0, %v3530_v17 }
 0x329   :  { %5514 = vmatprep.mubr.msk.f32.mxu1 %vm26_vm0, %v6875_v38 }
 0x32c   :  { %5515 = vmatmul.mubr.msk.f32.gmra.mrb[8].mxu1 %vm26_vm0, %v6879_v55 }
 0x32d   :  { %5517 = vmatprep.mubr.msk.f32.mxu1 %vm26_vm0, %v6883_v1 }
 0x330   :  { %5518 = vmatmul.mubr.msk.f32.gmra.mrb[10].mxu1 %vm26_vm0, %v6887_v31 }
 0x331   :  { %5520 = vmatprep.mubr.msk.f32.mxu1 %vm26_vm0, %v6891_v50 }
 0x334   :  { %5521 = vmatmul.mubr.msk.f32.gmra.mrb[12].mxu1 %vm26_vm0, %v6895_v7 }
 0x335   :  { %5523 = vmatprep.mubr.msk.f32.mxu1 %vm26_vm0, %v6899_v9 }
 0x338   :  { %5524 = vmatmul.mubr.msk.f32.gmra.mrb[14].mxu1 %vm26_vm0, %v3538_v36 }
 0x339   :  { %5528 = vmatprep.mubr.msk.f32.mxu1 %vm26_vm0, %v6788_v48 }
 0x33c   :  { %5529 = vmatmul.mubr.msk.f32.vlgmr.msra.gmra.mrb[0].mxu1 %vm26_vm0, %v6793_v49 }
 0x33d   :  { %5553 = vmatpush3.msra.mxu1 %v4794_v13  ;;  %5531 = vmatprep.mubr.msk.f32.mxu1 %vm26_vm0, %v6797_v11 }
 0x33e   :  { %5578 = vmatprep.subr.mxu1 %v4811_v60 }
 0x340   :  { %5532 = vmatmul.mubr.msk.f32.gmra.mrb[2].mxu1 %vm26_vm0, %v6801_v52 }
 0x341   :  { %5534 = vmatprep.mubr.msk.f32.mxu1 %vm26_vm0, %v6805_v23 }
 0x344   :  { %5535 = vmatmul.mubr.msk.f32.gmra.mrb[4].mxu1 %vm26_vm0, %v6809_v53 }
 0x345   :  { %5537 = vmatprep.mubr.msk.f32.mxu1 %vm26_vm0, %v3076_v12 }
 0x348   :  { %5538 = vmatmul.mubr.msk.f32.gmra.mrb[6].mxu1 %vm26_vm0, %v6561_v5  ;;  %v7097_v5 = vld [vmem:[%s7205_s5] ss:$0 sm:$0xff] }
 0x349   :  { %5540 = vmatprep.mubr.msk.f32.mxu1 %vm26_vm0, %v6816_v25 }
 0x34c   :  { %5541 = vmatmul.mubr.msk.f32.gmra.mrb[8].mxu1 %vm26_vm0, %v6820_v56 }
 0x34d   :  { %5543 = vmatprep.mubr.msk.f32.mxu1 %vm26_vm0, %v6824_v57 }
 0x350   :  { %5544 = vmatmul.mubr.msk.f32.gmra.mrb[10].mxu1 %vm26_vm0, %v6828_v26 }
 0x351   :  { %5546 = vmatprep.mubr.msk.f32.mxu1 %vm26_vm0, %v6832_v15 }
 0x354   :  { %5547 = vmatmul.mubr.msk.f32.gmra.mrb[12].mxu1 %vm26_vm0, %v6836_v61 }
 0x355   :  { %5549 = vmatprep.mubr.msk.f32.mxu1 %vm26_vm0, %v3084_v32 }
 0x358   :  { %5550 = vmatmul.mubr.msk.f32.gmra.mrb[14].mxu1 %vm26_vm0, %v6578_v30 }
 0x359   :  { %5554 = vmatprep.mubr.msk.f32.mxu1 %vm26_vm0, %v6698_v24 }
 0x35c   :  { %5555 = vmatmul.mubr.msk.f32.vlgmr.msra.gmra.mrb[0].mxu1 %vm26_vm0, %v6707_v27 }
 0x35d   :  { %5579 = vmatpush3.msra.mxu1 %v4811_v60  ;;  %5557 = vmatprep.mubr.msk.f32.mxu1 %vm26_vm0, %v6713_v58 }
 0x360   :  { %5558 = vmatmul.mubr.msk.f32.gmra.mrb[2].mxu1 %vm26_vm0, %v6721_v43 }
 0x361   :  { %5560 = vmatprep.mubr.msk.f32.mxu1 %vm26_vm0, %v6727_v6 }
 0x364   :  { %5561 = vmatmul.mubr.msk.f32.gmra.mrb[4].mxu1 %vm26_vm0, %v6735_v33 }
 0x365   :  { %5563 = vmatprep.mubr.msk.f32.mxu1 %vm26_vm0, %v3303_v22 }
 0x368   :  { %5564 = vmatmul.mubr.msk.f32.gmra.mrb[6].mxu1 %vm26_vm0, %v6596_v59  ;;  %v7102_v59 = vld [vmem:[%s7206_s6] ss:$0 sm:$0xff] }
 0x369   :  { %5566 = vmatprep.mubr.msk.f32.mxu1 %vm26_vm0, %v6753_v18 }
 0x36c   :  { %5567 = vmatmul.mubr.msk.f32.gmra.mrb[8].mxu1 %vm26_vm0, %v6758_v51 }
 0x36d   :  { %5569 = vmatprep.mubr.msk.f32.mxu1 %vm26_vm0, %v6763_v62 }
 0x370   :  { %5570 = vmatmul.mubr.msk.f32.gmra.mrb[10].mxu1 %vm26_vm0, %v6767_v42 }
 0x371   :  { %5572 = vmatprep.mubr.msk.f32.mxu1 %vm26_vm0, %v6771_v45 }
 0x374   :  { %5573 = vmatmul.mubr.msk.f32.gmra.mrb[12].mxu1 %vm26_vm0, %v6775_v20 }
 0x375   :  { %5575 = vmatprep.mubr.msk.f32.mxu1 %vm26_vm0, %v3311_v35 }
 0x378   :  { %5576 = vmatmul.mubr.msk.f32.gmra.mrb[14].mxu1 %vm26_vm0, %v6613_v2 }
 0x379   :  { %5580 = vmatprep.mubr.msk.f32.mxu1 %vm26_vm0, %v6849_v28 }
 0x37c   :  { %5581 = vmatmul.mubr.msk.f32.vlgmr.msra.gmra.mrb[0].mxu1 %vm26_vm0, %v6853_v47 }
 0x37d   :  { %5583 = vmatprep.mubr.msk.f32.mxu1 %vm26_vm0, %v6857_v44 }
 0x380   :  { %5584 = vmatmul.mubr.msk.f32.gmra.mrb[2].mxu1 %vm26_vm0, %v6861_v29 }
 0x381   :  { %5586 = vmatprep.mubr.msk.f32.mxu1 %vm26_vm0, %v6865_v3 }
 0x384   :  { %5587 = vmatmul.mubr.msk.f32.gmra.mrb[4].mxu1 %vm26_vm0, %v6869_v4 }
 0x385   :  { %5589 = vmatprep.mubr.msk.f32.mxu1 %vm26_vm0, %v3530_v17 }
 0x388   :  { %5590 = vmatmul.mubr.msk.f32.gmra.mrb[6].mxu1 %vm26_vm0, %v6630_v8 }
 0x389   :  { %5592 = vmatprep.mubr.msk.f32.mxu1 %vm26_vm0, %v6879_v55 }
 0x38c   :  { %5593 = vmatmul.mubr.msk.f32.gmra.mrb[8].mxu1 %vm26_vm0, %v6883_v1 }
 0x38d   :  { %5595 = vmatprep.mubr.msk.f32.mxu1 %vm26_vm0, %v6887_v31 }
 0x390   :  { %5596 = vmatmul.mubr.msk.f32.gmra.mrb[10].mxu1 %vm26_vm0, %v6891_v50 }
 0x391   :  { %5598 = vmatprep.mubr.msk.f32.mxu1 %vm26_vm0, %v6895_v7 }
 0x394   :  { %5599 = vmatmul.mubr.msk.f32.gmra.mrb[12].mxu1 %vm26_vm0, %v6899_v9 }
 0x395   :  { %5601 = vmatprep.mubr.msk.f32.mxu1 %vm26_vm0, %v3538_v36 }
 0x398   :  { %5602 = vmatmul.mubr.msk.f32.gmra.mrb[14].mxu1 %vm26_vm0, %v6647_v14 }
 0x44f   :  { %v5582_v30 = vpop.f32.mrb[0].mxu1 }
 0x450   :  { %v4439_v2 = vmul.f32 %v5582_v30, %v7097_v5  ;;  %v4336_v8 = vpop.f32.mrb[1].mxu1 }
 0x451   :  { %v4438_v24 = vmul.f32 %v7097_v5, %v4336_v8 }
 0x452   :  { %v4462_v27 = vadd.f32 %v7102_v59, %v4439_v2 }
 0x453   :  { %v4461_v14 = vadd.f32 %v7102_v59, %v4438_v24  ;;  %v5585_v58 = vpop.f32.mrb[2].mxu1 }
 0x454   :  { %v4478_v43 = vmax.f32 %v4462_v27, 0.0  ;;  %v4441_v6 = vmul.f32 %v5585_v58, %v7097_v5  ;;  %v4346_v33 = vpop.f32.mrb[3].mxu1 }
 0x455   :  { %v4477_v37 = vmax.f32 %v4461_v14, 0.0  ;;  %v4440_v16 = vmul.f32 %v7097_v5, %v4346_v33 }
 0x456   :  { %4494 = vst.msk [vmem:[%s7207_s7 + $0x8] sm:$0xff] %vm26_vm0, %v4478_v43  ;;  %v4464_v39 = vadd.f32 %v7102_v59, %v4441_v6 }
 0x457   :  { %4493 = vst.msk [vmem:[%s7207_s7] sm:$0xff] %vm26_vm0, %v4477_v37  ;;  %v4463_v40 = vadd.f32 %v7102_v59, %v4440_v16  ;;  %v5588_v18 = vpop.f32.mrb[4].mxu1 }
 0x458   :  { %v4480_v19 = vmax.f32 %v4464_v39, 0.0  ;;  %v4443_v41 = vmul.f32 %v5588_v18, %v7097_v5  ;;  %v4356_v51 = vpop.f32.mrb[5].mxu1 }
 0x459   :  { %v4479_v62 = vmax.f32 %v4463_v40, 0.0  ;;  %v4442_v42 = vmul.f32 %v7097_v5, %v4356_v51 }
 0x45a   :  { %4496 = vst.msk [vmem:[%s7207_s7 + $0x18] sm:$0xff] %vm26_vm0, %v4480_v19  ;;  %v4466_v45 = vadd.f32 %v7102_v59, %v4443_v41 }
 0x45b   :  { %4495 = vst.msk [vmem:[%s7207_s7 + $0x10] sm:$0xff] %vm26_vm0, %v4479_v62  ;;  %v4465_v20 = vadd.f32 %v7102_v59, %v4442_v42  ;;  %v5591_v21 = vpop.f32.mrb[6].mxu1 }
 0x45c   :  { %v4482_v46 = vmax.f32 %v4466_v45, 0.0  ;;  %v4445_v48 = vmul.f32 %v5591_v21, %v7097_v5  ;;  %v4366_v49 = vpop.f32.mrb[7].mxu1 }
 0x45d   :  { %v4481_v11 = vmax.f32 %v4465_v20, 0.0  ;;  %v4444_v52 = vmul.f32 %v7097_v5, %v4366_v49 }
 0x45e   :  { %4498 = vst.msk [vmem:[%s7207_s7 + $0x28] sm:$0xff] %vm26_vm0, %v4482_v46  ;;  %v4468_v23 = vadd.f32 %v7102_v59, %v4445_v48 }
 0x45f   :  { %4497 = vst.msk [vmem:[%s7207_s7 + $0x20] sm:$0xff] %vm26_vm0, %v4481_v11  ;;  %v4467_v53 = vadd.f32 %v7102_v59, %v4444_v52  ;;  %v5594_v54 = vpop.f32.mrb[8].mxu1 }
 0x460   :  { %v4484_v25 = vmax.f32 %v4468_v23, 0.0  ;;  %v4447_v56 = vmul.f32 %v5594_v54, %v7097_v5  ;;  %v4376_v57 = vpop.f32.mrb[9].mxu1 }
 0x461   :  { %v4483_v26 = vmax.f32 %v4467_v53, 0.0  ;;  %v4446_v15 = vmul.f32 %v7097_v5, %v4376_v57 }
 0x462   :  { %4500 = vst.msk [vmem:[%s7207_s7 + $0x38] sm:$0xff] %vm26_vm0, %v4484_v25  ;;  %v4470_v61 = vadd.f32 %v7102_v59, %v4447_v56 }
 0x463   :  { %4499 = vst.msk [vmem:[%s7207_s7 + $0x30] sm:$0xff] %vm26_vm0, %v4483_v26  ;;  %v4469_v63 = vadd.f32 %v7102_v59, %v4446_v15  ;;  %v5597_v0 = vpop.f32.mrb[10].mxu1 }
 0x464   :  { %v4486_v28 = vmax.f32 %v4470_v61, 0.0  ;;  %v4449_v47 = vmul.f32 %v5597_v0, %v7097_v5  ;;  %v4386_v44 = vpop.f32.mrb[11].mxu1 }
 0x465   :  { %v4485_v29 = vmax.f32 %v4469_v63, 0.0  ;;  %v4448_v3 = vmul.f32 %v7097_v5, %v4386_v44 }
 0x466   :  { %4502 = vst.msk [vmem:[%s7207_s7 + $0x48] sm:$0xff] %vm26_vm0, %v4486_v28  ;;  %v4472_v4 = vadd.f32 %v7102_v59, %v4449_v47 }
 0x467   :  { %4501 = vst.msk [vmem:[%s7207_s7 + $0x40] sm:$0xff] %vm26_vm0, %v4485_v29  ;;  %v4471_v38 = vadd.f32 %v7102_v59, %v4448_v3  ;;  %v5600_v55 = vpop.f32.mrb[12].mxu1 }
 0x468   :  { %v4488_v1 = vmax.f32 %v4472_v4, 0.0  ;;  %v4451_v31 = vmul.f32 %v5600_v55, %v7097_v5  ;;  %v4396_v50 = vpop.f32.mrb[13].mxu1 }
 0x469   :  { %v4487_v7 = vmax.f32 %v4471_v38, 0.0  ;;  %v4450_v9 = vmul.f32 %v7097_v5, %v4396_v50 }
 0x46a   :  { %4504 = vst.msk [vmem:[%s7207_s7 + $0x58] sm:$0xff] %vm26_vm0, %v4488_v1  ;;  %v4474_v10 = vadd.f32 %v7102_v59, %v4451_v31 }
 0x46b   :  { %4503 = vst.msk [vmem:[%s7207_s7 + $0x50] sm:$0xff] %vm26_vm0, %v4487_v7  ;;  %v4473_v12 = vadd.f32 %v7102_v59, %v4450_v9  ;;  %v5603_v32 = vpop.f32.mrb[14].mxu1 }
 0x46c   :  { %v4490_v34 = vmax.f32 %v4474_v10, 0.0  ;;  %v4453_v22 = vmul.f32 %v5603_v32, %v7097_v5  ;;  %v4406_v35 = vpop.f32.mrb[15].mxu1 }
 0x46d   :  { %v4489_v13 = vmax.f32 %v4473_v12, 0.0  ;;  %v4452_v17 = vmul.f32 %v7097_v5, %v4406_v35 }
 0x46e   :  { %4506 = vst.msk [vmem:[%s7207_s7 + $0x68] sm:$0xff] %vm26_vm0, %v4490_v34  ;;  %v4476_v36 = vadd.f32 %v7102_v59, %v4453_v22 }
 0x46f   :  { %4505 = vst.msk [vmem:[%s7207_s7 + $0x60] sm:$0xff] %vm26_vm0, %v4489_v13  ;;  %v4475_v60 = vadd.f32 %v7102_v59, %v4452_v17 }
 0x470   :  { %v4492_v30 = vmax.f32 %v4476_v36, 0.0 }
 0x471   :  { %v4491_v2 = vmax.f32 %v4475_v60, 0.0 }
 0x472   :  { %4508 = vst.msk [vmem:[%s7207_s7 + $0x78] sm:$0xff] %vm26_vm0, %v4492_v30 }
 0x473   :  { %4507 = vst.msk [vmem:[%s7207_s7 + $0x70] sm:$0xff] %vm26_vm0, %v4491_v2 }

</bundles_post_ra>
